<compile_context>
chip_gen: v7x
topology: tpu7x:2x2x1
jax: 0.10.0
libtpu: 0.0.40
codegen_flags: <defaults>
</compile_context>

<pallas_src>
import functools

import jax
import jax.numpy as jnp
from jax.experimental import pallas as pl
from jax.experimental.pallas import tpu as pltpu


def _harmonet_kernel(n_harmonic, *refs):
    """refs = (x_t, w0_t, b0, w1_t, b1, ..., w_lin, b_lin, out_t).

    All activations are in transposed (features, TILE_B) layout so the batch
    dimension is lane-dense.  Weights arrive pre-transposed as (out, in) so each
    layer is a plain `w @ h` MXU matmul with N = TILE_B.
    """
    x_ref = refs[0]
    o_ref = refs[-1]

    h = x_ref[...]  # bf16, (n_in, TILE_B)
    idx = 1
    # Harmonic layers:  h = sin(w @ h + b)   (bf16 MXU inputs, f32 accum/sin)
    for _ in range(n_harmonic):
        w = refs[idx][...]        # bf16, (m, n)
        b = refs[idx + 1][...]    # f32,  (m, 1) -> lane broadcast
        idx += 2
        z = jnp.dot(w, h, preferred_element_type=jnp.float32) + b
        h = jnp.sin(z).astype(jnp.bfloat16)   # cast only for the next MXU pass
    # Final linear layer:  y = W_lin @ h + b_lin   (f32 output)
    w_lin = refs[idx][...]        # bf16, (n_out, n_in)
    b_lin = refs[idx + 1][...]    # f32,  (n_out, 1)
    o_ref[...] = jnp.dot(w_lin, h, preferred_element_type=jnp.float32) + b_lin


def init_harmonet_params(key, dims):
    """Deterministic init mimicking PyTorch Linear default
    (uniform(-1/sqrt(fan_in), 1/sqrt(fan_in)))."""
    params = []
    # harmonic layers: weight (n, m), bias (m,)
    for n, m in zip(dims[:-2], dims[1:-1]):
        key, kw, kb = jax.random.split(key, 3)
        bound = 1.0 / jnp.sqrt(float(n))
        w = jax.random.uniform(kw, (n, m), jnp.float32, -bound, bound)
        b = jax.random.uniform(kb, (m,), jnp.float32, -bound, bound)
        params.append((w, b))
    # final linear: stored PyTorch-style as (out, in), bias (out,)
    n_in, n_out = dims[-2], dims[-1]
    key, kw, kb = jax.random.split(key, 3)
    bound = 1.0 / jnp.sqrt(float(n_in))
    w_lin = jax.random.uniform(kw, (n_out, n_in), jnp.float32, -bound, bound)
    b_lin = jax.random.uniform(kb, (n_out,), jnp.float32, -bound, bound)
    params.append((w_lin, b_lin))
    return params


def harmonet_forward(x, params, dims, *, tile_b=256, mxu_dtype=jnp.bfloat16):
    """Full HarmoNet forward as one fused, batch-tiled Pallas kernel.

    x: (batch, dims[0]) f32.  Returns (batch, dims[-1]) f32.
    """
    batch = x.shape[0]
    n_harmonic = len(dims) - 2

    # Single block for small batches (block == full dim is always legal);
    # otherwise a lane-aligned tile (multiple of 128) with masked remainder.
    if batch <= tile_b:
        tile_b = batch
    else:
        assert tile_b % 128 == 0, "tile_b must be a multiple of 128 lanes"

    # --- layout plumbing: batch on the lane (last) axis -------------------
    x_t = x.T.astype(mxu_dtype)                        # (n_in, batch)
    flat_inputs = [x_t]
    in_specs = [pl.BlockSpec((dims[0], tile_b), lambda i: (0, i))]

    for w, b in params[:-1]:
        w_t = w.T.astype(mxu_dtype)                    # (m, n)
        b_col = b.reshape(-1, 1).astype(jnp.float32)   # (m, 1)
        flat_inputs += [w_t, b_col]
        # constant index_map -> weight/bias stay resident in VMEM across steps
        in_specs += [pl.BlockSpec(w_t.shape, lambda i: (0, 0)),
                     pl.BlockSpec(b_col.shape, lambda i: (0, 0))]

    w_lin, b_lin = params[-1]                          # (n_out, n_in), (n_out,)
    w_lin_c = w_lin.astype(mxu_dtype)
    b_lin_c = b_lin.reshape(-1, 1).astype(jnp.float32)
    flat_inputs += [w_lin_c, b_lin_c]
    in_specs += [pl.BlockSpec(w_lin_c.shape, lambda i: (0, 0)),
                 pl.BlockSpec(b_lin_c.shape, lambda i: (0, 0))]

    out_spec = pl.BlockSpec((dims[-1], tile_b), lambda i: (0, i))
    out_shape = jax.ShapeDtypeStruct((dims[-1], batch), jnp.float32)

    # --- advisory cost estimate -------------------------------------------
    layer_pairs = list(zip(dims[:-1], dims[1:]))
    flops = 2 * batch * sum(n * m for n, m in layer_pairs)
    transcendentals = batch * sum(dims[1:-1])          # one sin per hidden unit
    bytes_accessed = (sum(int(a.size) * a.dtype.itemsize for a in flat_inputs)
                      + batch * dims[-1] * 4)
    cost = pl.CostEstimate(flops=flops,
                           transcendentals=transcendentals,
                           bytes_accessed=bytes_accessed)

    kernel = functools.partial(_harmonet_kernel, n_harmonic)

    out_t = pl.pallas_call(
        kernel,
        grid=(pl.cdiv(batch, tile_b),),
        in_specs=in_specs,
        out_specs=out_spec,
        out_shape=out_shape,
        cost_estimate=cost,
        compiler_params=pltpu.CompilerParams(
            dimension_semantics=("parallel",),   # megacore sharding on v7x
        ),
    )(*flat_inputs)

    # back to the module's (batch, n_out) layout
    return out_t.T


def harmonet_reference(x, params, mxu_dtype=jnp.bfloat16):
    """Pure-JAX reference mirroring the kernel's bf16-MXU / f32-accumulate math."""
    h = x
    for w, b in params[:-1]:
        z = jnp.dot(h.astype(mxu_dtype), w.astype(mxu_dtype),
                    preferred_element_type=jnp.float32) + b
        h = jnp.sin(z)
    w_lin, b_lin = params[-1]
    return jnp.dot(h.astype(mxu_dtype), w_lin.T.astype(mxu_dtype),
                   preferred_element_type=jnp.float32) + b_lin


if __name__ == "__main__":
    # HarmoNet(16, 32, 32, 8) -> two HarmonicLayers + Linear(32, 8)
    dims = (16, 32, 32, 8)
    batch = 1024          # tiled into 4 grid steps of 256 rows

    key = jax.random.PRNGKey(0)
    k_x, k_p = jax.random.split(key)
    x = jax.random.normal(k_x, (batch, dims[0]), jnp.float32)
    params = init_harmonet_params(k_p, dims)

    out = harmonet_forward(x, params, dims, tile_b=256)
    out = jax.block_until_ready(out)

    ref = harmonet_reference(x, params)
    assert out.shape == (batch, dims[-1])
    assert jnp.allclose(out, ref, atol=1e-3, rtol=1e-3), "mismatch vs reference"

    print("KERNEL_OK")
</pallas_src>

<mosaic_0001>
module attributes {stable_mosaic.version = 11 : i64} {
  func.func @_harmonet_kernel(%arg0: i32, %arg1: memref<16x256xbf16, #tpu.memory_space<vmem>>, %arg2: memref<32x16xbf16, #tpu.memory_space<vmem>>, %arg3: memref<32x1xf32, #tpu.memory_space<vmem>>, %arg4: memref<32x32xbf16, #tpu.memory_space<vmem>>, %arg5: memref<32x1xf32, #tpu.memory_space<vmem>>, %arg6: memref<8x32xbf16, #tpu.memory_space<vmem>>, %arg7: memref<8x1xf32, #tpu.memory_space<vmem>>, %arg8: memref<8x256xf32, #tpu.memory_space<vmem>>) attributes {dimension_semantics = [#tpu.dimension_semantics<parallel>], iteration_bounds = array<i64: 4>, scalar_prefetch = 0 : i64, scratch_operands = 0 : i64, tpu.core_type = #tpu.core_type<tc>, window_params = [{transform_indices = @transform_0, window_bounds = array<i64: 16, 256>}, {pipeline_mode = #tpu.pipeline_mode<synchronous>, transform_indices = @transform_1, window_bounds = array<i64: 32, 16>}, {pipeline_mode = #tpu.pipeline_mode<synchronous>, transform_indices = @transform_2, window_bounds = array<i64: 32, 1>}, {pipeline_mode = #tpu.pipeline_mode<synchronous>, transform_indices = @transform_3, window_bounds = array<i64: 32, 32>}, {pipeline_mode = #tpu.pipeline_mode<synchronous>, transform_indices = @transform_4, window_bounds = array<i64: 32, 1>}, {pipeline_mode = #tpu.pipeline_mode<synchronous>, transform_indices = @transform_5, window_bounds = array<i64: 8, 32>}, {pipeline_mode = #tpu.pipeline_mode<synchronous>, transform_indices = @transform_6, window_bounds = array<i64: 8, 1>}, {transform_indices = @transform_7, window_bounds = array<i64: 8, 256>}]} {
    %c0 = arith.constant 0 : index
    %c0_0 = arith.constant 0 : index
    %0 = vector.load %arg1[%c0, %c0_0] : memref<16x256xbf16, #tpu.memory_space<vmem>>, vector<16x256xbf16>
    %c0_1 = arith.constant 0 : index
    %c0_2 = arith.constant 0 : index
    %1 = vector.load %arg2[%c0_1, %c0_2] : memref<32x16xbf16, #tpu.memory_space<vmem>>, vector<32x16xbf16>
    %c0_3 = arith.constant 0 : index
    %c0_4 = arith.constant 0 : index
    %2 = vector.load %arg3[%c0_3, %c0_4] : memref<32x1xf32, #tpu.memory_space<vmem>>, vector<32x1xf32>
    %cst = arith.constant dense<0.000000e+00> : vector<32x256xf32>
    %3 = tpu.matmul %1, %0, %cst {dimension_numbers = #tpu.dot_dimension_numbers<[1], [0], [0], [1], [0, 0, 1, 1], [], []>} : vector<32x16xbf16>, vector<16x256xbf16>, vector<32x256xf32> -> vector<32x256xf32>
    %4 = vector.broadcast %2 : vector<32x1xf32> to vector<32x256xf32>
    %5 = arith.addf %3, %4 : vector<32x256xf32>
    %6 = math.sin %5 : vector<32x256xf32>
    %7 = arith.truncf %6 : vector<32x256xf32> to vector<32x256xbf16>
    %c0_5 = arith.constant 0 : index
    %c0_6 = arith.constant 0 : index
    %8 = vector.load %arg4[%c0_5, %c0_6] : memref<32x32xbf16, #tpu.memory_space<vmem>>, vector<32x32xbf16>
    %c0_7 = arith.constant 0 : index
    %c0_8 = arith.constant 0 : index
    %9 = vector.load %arg5[%c0_7, %c0_8] : memref<32x1xf32, #tpu.memory_space<vmem>>, vector<32x1xf32>
    %cst_9 = arith.constant dense<0.000000e+00> : vector<32x256xf32>
    %10 = tpu.matmul %8, %7, %cst_9 {dimension_numbers = #tpu.dot_dimension_numbers<[1], [0], [0], [1], [0, 0, 1, 1], [], []>} : vector<32x32xbf16>, vector<32x256xbf16>, vector<32x256xf32> -> vector<32x256xf32>
    %11 = vector.broadcast %9 : vector<32x1xf32> to vector<32x256xf32>
    %12 = arith.addf %10, %11 : vector<32x256xf32>
    %13 = math.sin %12 : vector<32x256xf32>
    %14 = arith.truncf %13 : vector<32x256xf32> to vector<32x256xbf16>
    %c0_10 = arith.constant 0 : index
    %c0_11 = arith.constant 0 : index
    %15 = vector.load %arg6[%c0_10, %c0_11] : memref<8x32xbf16, #tpu.memory_space<vmem>>, vector<8x32xbf16>
    %c0_12 = arith.constant 0 : index
    %c0_13 = arith.constant 0 : index
    %16 = vector.load %arg7[%c0_12, %c0_13] : memref<8x1xf32, #tpu.memory_space<vmem>>, vector<8x1xf32>
    %cst_14 = arith.constant dense<0.000000e+00> : vector<8x256xf32>
    %17 = tpu.matmul %15, %14, %cst_14 {dimension_numbers = #tpu.dot_dimension_numbers<[1], [0], [0], [1], [0, 0, 1, 1], [], []>} : vector<8x32xbf16>, vector<32x256xbf16>, vector<8x256xf32> -> vector<8x256xf32>
    %18 = vector.broadcast %16 : vector<8x1xf32> to vector<8x256xf32>
    %19 = arith.addf %17, %18 : vector<8x256xf32>
    %c0_15 = arith.constant 0 : index
    %c0_16 = arith.constant 0 : index
    %20 = vector.load %arg8[%c0_15, %c0_16] : memref<8x256xf32, #tpu.memory_space<vmem>>, vector<8x256xf32>
    tpu.vector_store %arg8[%c0_15, %c0_16], %19 {strides = array<i32>} : memref<8x256xf32, #tpu.memory_space<vmem>>, vector<8x256xf32>,
    return
  }
  func.func @transform_0(%arg0: i32) -> (i32, i32) {
    %c0_i32 = arith.constant 0 : i32
    %c0_i32_0 = arith.constant 0 : i32
    return %c0_i32, %arg0 : i32, i32
  }
  func.func @transform_1(%arg0: i32) -> (i32, i32) {
    %c0_i32 = arith.constant 0 : i32
    %c0_i32_0 = arith.constant 0 : i32
    %c0_i32_1 = arith.constant 0 : i32
    return %c0_i32, %c0_i32_0 : i32, i32
  }
  func.func @transform_2(%arg0: i32) -> (i32, i32) {
    %c0_i32 = arith.constant 0 : i32
    %c0_i32_0 = arith.constant 0 : i32
    %c0_i32_1 = arith.constant 0 : i32
    return %c0_i32, %c0_i32_0 : i32, i32
  }
  func.func @transform_3(%arg0: i32) -> (i32, i32) {
    %c0_i32 = arith.constant 0 : i32
    %c0_i32_0 = arith.constant 0 : i32
    %c0_i32_1 = arith.constant 0 : i32
    return %c0_i32, %c0_i32_0 : i32, i32
  }
  func.func @transform_4(%arg0: i32) -> (i32, i32) {
    %c0_i32 = arith.constant 0 : i32
    %c0_i32_0 = arith.constant 0 : i32
    %c0_i32_1 = arith.constant 0 : i32
    return %c0_i32, %c0_i32_0 : i32, i32
  }
  func.func @transform_5(%arg0: i32) -> (i32, i32) {
    %c0_i32 = arith.constant 0 : i32
    %c0_i32_0 = arith.constant 0 : i32
    %c0_i32_1 = arith.constant 0 : i32
    return %c0_i32, %c0_i32_0 : i32, i32
  }
  func.func @transform_6(%arg0: i32) -> (i32, i32) {
    %c0_i32 = arith.constant 0 : i32
    %c0_i32_0 = arith.constant 0 : i32
    %c0_i32_1 = arith.constant 0 : i32
    return %c0_i32, %c0_i32_0 : i32, i32
  }
  func.func @transform_7(%arg0: i32) -> (i32, i32) {
    %c0_i32 = arith.constant 0 : i32
    %c0_i32_0 = arith.constant 0 : i32
    return %c0_i32, %arg0 : i32, i32
  }
}

</mosaic_0001>

<bundles_post_ra>
// kernel: tpu_custom_call.1
= control target key start
LH: loop header
LB: loop body
LE: loop exit
PB: predicated region body
PF: predicated region fallthrough
CT: control target
= control target key end

     0   :  { %12 = vsyncpa [#allocation4], 0  ;;  %s4356_s0 = inlined_call_operand.vmem [shape: bf16[16,1024], index: 0, kind: input, shape index: {}]   ;;  %s4357_s1 = inlined_call_operand.vmem [shape: bf16[32,16], index: 1, kind: input, shape index: {}]   ;;  %s4358_s2 = inlined_call_operand.vmem [shape: f32[32,1], index: 2, kind: input, shape index: {}]   ;;  %s4359_s3 = inlined_call_operand.vmem [shape: bf16[32,32], index: 3, kind: input, shape index: {}]   ;;  %s4360_s4 = inlined_call_operand.vmem [shape: f32[32,1], index: 4, kind: input, shape index: {}]   ;;  %s4361_s5 = inlined_call_operand.vmem [shape: bf16[8,32], index: 5, kind: input, shape index: {}]   ;;  %s4362_s6 = inlined_call_operand.vmem [shape: f32[8,1], index: 6, kind: input, shape index: {}]   ;;  %s4363_s7 = inlined_call_operand.hbm [shape: f32[8,1024], index: 7, kind: output, shape index: {}]  }
   0x1   :  { %14 = vsyncpa [#allocation4 + $0x1], 0  ;;  %s2718_s24 = smov 0   ;;  %s2720_s25 = smov 0  }
   0x2   :  { %s2722_s26 = smov 0   ;;  %s2724_s27 = smov 0  }
   0x3 LB: > { %s2331_s28 = sadd.s32 4294967295, %s2668_s27   ;;  %s2332_s29 = sadd.s32 4294967294, %s2668_s27   ;;  %s2668_s27 = sphi %s2724_s27, %s4504_s27   ;;  %s2664_s26 = sphi %s2722_s26, %s4503_s26   ;;  %s2660_s25 = sphi %s2720_s25, %s4502_s25   ;;  %s2656_s24 = sphi %s2718_s24, %s4501_s24  }
   0x4   : > { %s2741_s30 = sadd.s32 1, %s2668_s27   ;;  %s27_s8 = sadd.s32 1, %s2664_s26 }
   0x5   : > { %s24_s9 = ssub.s32 %s2668_s27, %s2741_s30  ;;  %p34_p0 = scmp.ne.s32.totalorder %s2664_s26, %s2660_s25 }
   0x6   : > { %p25_p1 = scmp.eq.s32.totalorder %s24_s9, 0  ;;  %p35_p2 = scmp.eq.s32.totalorder %s2668_s27, 0 }
   0x7   : > { %p190_p3 = scmp.eq.s32.totalorder %s2331_s28, 3  ;;  %p195_p4 = scmp.ne.s32.totalorder %s2660_s25, %s2656_s24 }
   0x8   : > { %s2754_s10 = scalar_select %p25_p1, %s2664_s26, %s27_s8  }
   0x9   : > { %p36_p5 = por %p35_p2, %p34_p0  ;;  %p2756_p6 = por %p190_p3, %p34_p0 }
   0xa   : > { %p196_p7 = scmp.eq.s32.totalorder %s2332_s29, 3  ;;  %p2334_p9 = scmp.ge.s32.totalorder %s2668_s27, 4 }
   0xc   : > { %p2760_p8 = por %p196_p7, %p195_p4  ;;  %230 = sbr.rel (%p2334_p9) target bundleno = 26 (0x1a), region = 40 }
  0x13   : > { %233 = sbr.rel (!%p36_p5) target bundleno = 26 (0x1a), region = 44  ;;  %s235_s13 = sand.u32 (%p36_p5), 1, %s2664_s26  }
  0x14   : > { %s2421_s14 = sshll.u32 (%p36_p5), %s2668_s27, 3  ;;  %s2335_s15 = sshll.u32 (%p36_p5), %s235_s13, 4 }
  0x15   : > { %s240_s18 = scalar_lea.vmem (%p36_p5), %s4356_s0, %s2421_s14  ;;  %s237_s19 = scalar_lea.vmem (%p36_p5), [#allocation2], %s2335_s15 }
  0x16   : > { %v270_v0 = vld [vmem:[%s240_s18] sm:$0xff] (%p36_p5) }
  0x17   : > { %v272_v1 = vld [vmem:[%s240_s18 + $0x20] sm:$0xff] (%p36_p5)  ;;  %271 = vst [vmem:[%s237_s19] sm:$0xff] (%p36_p5), %v270_v0 }
  0x18   : > { %273 = vst [vmem:[%s237_s19 + $0x8] sm:$0xff] (%p36_p5), %v272_v1 }
  0x1a PF: > { %p2338_p10 = scmp.ge.s32.totalorder %s2668_s27, 1  ;;  %p278_p11 = scmp.lt.s32.totalorder %s2668_s27, 5 }
  0x1c   : > { %p279_p12 = pnand %p2338_p10, %p278_p11 }
  0x1e   : > { %282 = sbr.rel (%p279_p12) target bundleno = 1136 (0x470), region = 82 }
  0x25   : > { %s285_s20 = sand.u32 1, %s2660_s25   ;;  %v4364_v2 = vmov 0   ;;  %v325_v3 = vld [vmem:[%s4358_s2] sm:$0xff]  ;;  %v326_v6 = vld [vmem:[%s4358_s2 + $0x8] sm:$0xff]  ;;  %v327_v7 = vld [vmem:[%s4358_s2 + $0x10] sm:$0xff]  ;;  %vm369_vm0 = vcmask 130048  }
  0x26   : > { %s2775_s21 = sshll.u32 %s285_s20, 4  ;;  %408 = vmatprep.mubr.bf16.mxu0 %v4364_v2  ;;  %2533 = vset.pattern.permute.xlu0 %v4364_v2  ;;  %v2538_v8 = vld [vmem:[%s4357_s1] sm:$0xff]   ;;  %v328_v9 = vld [vmem:[%s4358_s2 + $0x18] sm:$0xff]  ;;  %v1270_v11 = vld [vmem:[%s4360_s4 + $0x8] sm:$0xff]  ;;  %v4373_v41 = vmov 683565275  }
  0x27   : > { %2534 = vset.pattern.permute.xlu1 %v4364_v2  ;;  %1342 = vmatprep.mubr.bf16.mxu1 %v4364_v2  ;;  %s287_s29 = scalar_lea.vmem [#allocation2], %s2775_s21  ;;  %v1269_v10 = vld [vmem:[%s4360_s4] sm:$0xff]  ;;  %v1271_v12 = vld [vmem:[%s4360_s4 + $0x10] sm:$0xff]  ;;  %v2539_v13 = vld [vmem:[%s4357_s1 + $0x8] sm:$0xff]   ;;  %v4371_v43 = vmov 2475754826  }
  0x28   : > { %v2535_v4 = vld [vmem:[%s287_s29 + $0x4] ss:$8 sps:$4 sm:$0xff]   ;;  %331 = vperm.xlu0 %2533, %v325_v3   ;;  %v2537_v5 = vld [vmem:[%s287_s29] ss:$8 sps:$4 sm:$0xff]   ;;  %341 = vperm.xlu1 %2534, %v327_v7   ;;  %v4375_v47 = vmov 2131351028  }
  0x29   : > { %376 = vmatprep.subr.bf16.mxu0 %v2535_v4  ;;  %v1272_v14 = vld [vmem:[%s4360_s4 + $0x18] sm:$0xff]  ;;  %v2200_v15 = vld [vmem:[%s4362_s6] sm:$0xff]  ;;  %v4377_v50 = vmov 2102212464   ;;  %v4383_v53 = vmov 920167782  }
  0x2a   : > { %377 = vmatpush1.bf16.msra.mxu0 %v2537_v5  ;;  %v4385_v56 = vmov 1326507024   ;;  %s2422_s13 = sshll.u32 %s2331_s28, 8  ;;  %s315_s14 = scalar_lea.vmem [#allocation3], %s2775_s21 }
  0x2b   : > { %s2267_s15 = sshll.u32 %s315_s14, 4  ;;  %s4312_s18 = scalar_lea.hbm %s4363_s7, %s2422_s13  ;;  %s4314_s15 = int_to_ptr.vmem [resolvable:$true] %s2267_s15 }
  0x2c   : > { %336 = vperm.xlu0 %2533, %v326_v6   ;;  %346 = vperm.xlu1 %2534, %v328_v9   ;;  %s2253_s28 = scalar_lea.sflag [#allocation4], %s285_s20  ;;  %s2606_s21 = scalar_lea.vmem %s4314_s15, 256 }
  0x2d   : > { %2345 = vmatmul.mubr.msk.bf16.vlgmr.msra.gmra.mrb[0].mxu0 %vm369_vm0, %v2538_v8  ;;  %p2607_p13 = scmp.ne.s32.totalorder %s4314_s15, %s2606_s21  ;;  %s2677_s19 = smov [#allocation3]  }
  0x2e   : > { %418 = vmatprep.mubr.bf16.mxu0 %v4364_v2  ;;  %s2610_s22 = sshll.u32 %s2677_s19, 4  ;;  %s2611_s22 = int_to_ptr.vmem [resolvable:$false] %s2610_s22 }
  0x2f   : > { %p2608_p0 = pnand %p2607_p13, %p2756_p6  ;;  %s2612_s23 = scalar_lea.vmem %s2611_s22, 512 }
  0x30   : > { %1275 = vperm.xlu0 %2533, %v1269_v10   ;;  %1280 = vperm.xlu1 %2534, %v1270_v11   ;;  %p2613_p2 = scmp.lt.s32.totalorder %s4314_s15, %s2611_s22  ;;  %p2614_p3 = scmp.lt.s32.totalorder %s2612_s23, %s2606_s21 }
  0x31   : > { %p2609_p1 = pneg %p2608_p0 }
  0x32   : > { %p2615_p4 = por %p2614_p3, %p2613_p2 }
  0x34   : > { %1285 = vperm.xlu0 %2533, %v1271_v12   ;;  %1290 = vperm.xlu1 %2534, %v1272_v14   ;;  %p2616_p5 = pnand %p2615_p4, %p2609_p1 }
  0x35   : > { %2346 = vmatmul.mubr.msk.bf16.gmra.mrb[4].mxu0 %vm369_vm0, %v2539_v13 }
  0x36   : > { %2241 = vmatprep.mubr.bf16.mxu0 %v4364_v2 }
  0x38   : > { %2203 = vperm.xlu0 %2533, %v2200_v15  }
  0xa7   : > { %v2817_v16 = vpop.permute.xlu0 %331 }
  0xab   : > { %v2822_v20 = vpop.permute.xlu0 %336 }
 0x100   : > { %v410_v17 = vpop.f32.mrb[0].mxu0 }
 0x101   : > { %v2820_v18 = vadd.f32 %v410_v17, %v2817_v16  ;;  %v412_v19 = vpop.f32.mrb[1].mxu0 }
 0x102   : > { %v414_v21 = vpop.f32.mrb[2].mxu0  ;;  %v2878_v12 = vadd.f32 %v412_v19, %v2817_v16 }
 0x103   : > { %4416 = vst [vmem:[#allocation6_spill] sm:$0xff] %v2820_v18  ;;  %v432_v22 = vand.u32 2139095040, %v2820_v18  ;;  %v2826_v23 = vadd.f32 %v414_v21, %v2822_v20  ;;  %v2828_v24 = vpop.f32.mrb[3].mxu0  ;;  %v4367_v32 = vand.u32 2147483647, %v2820_v18 }
 0x104   : > { %4418 = vst [vmem:[#allocation8_spill] sm:$0xff] %v2878_v12  ;;  %v536_v16 = vand.u32 2139095040, %v2878_v12 }
 0x105   : > { %4417 = vst [vmem:[#allocation7_spill] sm:$0xff] %v2826_v23  ;;  %v433_v25 = vshrl.u32 %v432_v22, 23  ;;  %v640_v27 = vand.u32 2139095040, %v2826_v23  ;;  %v436_v37 = vand.u32 8388607, %v4367_v32 }
 0x106   : > { %v4365_v45 = vand.u32 2147483647, %v2826_v23 }
 0x107   : > { %v2347_v26 = vadd.s32 4294967169, %v433_v25  ;;  %v641_v33 = vshrl.u32 %v640_v27, 23  ;;  %v437_v62 = vor.u32 8388608, %v436_v37  ;;  %v2889_v27 = vpop.permute.xlu1 %341 }
 0x108   : > { %v2831_v28 = vpop.f32.mrb[4].mxu0  ;;  %v644_v4 = vand.u32 8388607, %v4365_v45 }
 0x109   : > { %v439_v29 = vadd.s32 1, %v2347_v26  ;;  %v2833_v30 = vpop.f32.mrb[5].mxu0  ;;  %v2355_v39 = vadd.s32 4294967169, %v641_v33  ;;  %v477_v11 = vshll.u32 %v437_v62, 8  ;;  %v2895_v33 = vadd.f32 %v2831_v28, %v2889_v27 }
 0x10a   : > { %v2835_v31 = vpop.f32.mrb[6].mxu0  ;;  %v645_v15 = vor.u32 8388608, %v644_v4 }
 0x10b   : > { %vm440_vm1 = vcmp.gt.s32.totalorder %v439_v29, 0  ;;  %v2838_v34 = vpop.f32.mrb[7].mxu0  ;;  %v647_v61 = vadd.s32 1, %v2355_v39  ;;  %4419 = vst [vmem:[#allocation9_spill] sm:$0xff] %v2895_v33 }
 0x10c   : > { %v441_v35 = vsel %vm440_vm1, %v439_v29, 0  ;;  %v2901_v39 = vshll.u32 %v645_v15, 8 }
 0x10d   : > { %v443_v36 = vand.u32 31, %v441_v35  ;;  %v2842_v40 = vshrl.u32 %v441_v35, 5  ;;  %vm648_vm6 = vcmp.gt.s32.totalorder %v647_v61, 0 }
 0x10e   : > { %v649_v17 = vsel %vm648_vm6, %v647_v61, 0 }
 0x10f   : > { %v444_v38 = vsub.s32 32, %v443_v36  ;;  %v446_v42 = vshll.u32 %v4373_v41, %v443_v36  ;;  %v449_v44 = vshll.u32 %v4371_v43, %v443_v36  ;;  %v452_v49 = vshll.u32 %v4375_v47, %v443_v36 }
 0x110   : > { %v455_v52 = vshll.u32 %v4377_v50, %v443_v36  ;;  %v458_v55 = vshll.u32 %v4383_v53, %v443_v36  ;;  %vm461_vm2 = vcmp.lt.s32.totalorder %v2842_v40, 1  ;;  %vm464_vm3 = vcmp.lt.s32.totalorder %v2842_v40, 4 }
 0x111   : > { %v447_v46 = vshrl.u32 %v4371_v43, %v444_v38  ;;  %v450_v48 = vshrl.u32 %v4375_v47, %v444_v38  ;;  %v453_v51 = vshrl.u32 %v4377_v50, %v444_v38  ;;  %v456_v54 = vshrl.u32 %v4383_v53, %v444_v38 }
 0x112   : > { %v459_v57 = vshrl.u32 %v4385_v56, %v444_v38  ;;  %vm463_vm4 = vcmp.lt.s32.totalorder %v2842_v40, 3  ;;  %vm462_vm5 = vcmp.lt.s32.totalorder %v2842_v40, 2  ;;  %v651_v26 = vand.u32 31, %v649_v17 }
 0x113   : > { %v448_v58 = vor.u32 %v447_v46, %v446_v42  ;;  %v451_v59 = vor.u32 %v450_v48, %v449_v44  ;;  %v454_v60 = vor.u32 %v453_v51, %v452_v49  ;;  %v457_v63 = vor.u32 %v456_v54, %v455_v52 }
 0x114   : > { %v460_v0 = vor.u32 %v459_v57, %v458_v55  ;;  %v445_v29 = vshrl.u32 %v4373_v41, %v444_v38  ;;  %v652_v19 = vsub.s32 32, %v651_v26  ;;  %v650_v37 = vshrl.u32 %v649_v17, 5 }
 0x115   : > { %v469_v1 = vsel %vm461_vm2, %v448_v58, %v451_v59  ;;  %v473_v3 = vsel %vm461_vm2, %v451_v59, %v454_v60  ;;  %v470_v5 = vsel %vm464_vm3, %v457_v63, 920167782  ;;  %v466_v21 = vsel %vm464_vm3, %v454_v60, 2102212464 }
 0x116   : > { %v474_v6 = vsel %vm464_vm3, %v460_v0, 1326507024  ;;  %v471_v7 = vsel %vm463_vm4, %v454_v60, %v470_v5  ;;  %v465_v35 = vsel %vm461_vm2, %v445_v29, %v448_v58  ;;  %v467_v36 = vsel %vm463_vm4, %v451_v59, %v466_v21 }
 0x117   : > { %v475_v8 = vsel %vm463_vm4, %v457_v63, %v474_v6  ;;  %v472_v9 = vsel %vm462_vm5, %v469_v1, %v471_v7  ;;  %v654_v42 = vshll.u32 %v4373_v41, %v651_v26  ;;  %v655_v38 = vshrl.u32 %v4371_v43, %v652_v19 }
 0x118   : > { %v476_v10 = vsel %vm462_vm5, %v473_v3, %v475_v8  ;;  %v2880_v13 = vmul.u32.u64.low %v477_v11, %v472_v9  ;;  %v2881_v14 = vmul.u32.u64.high %v477_v11, %v472_v9, %v2880_v13  ;;  %v657_v44 = vshll.u32 %v4371_v43, %v651_v26 }
 0x119   : > { %v2886_v22 = vmul.u32.u64.low %v477_v11, %v476_v10  ;;  %v2887_v25 = vmul.u32.u64.high %v477_v11, %v476_v10, %v2886_v22  ;;  %v658_v46 = vshrl.u32 %v4375_v47, %v652_v19  ;;  %v660_v28 = vshll.u32 %v4375_v47, %v651_v26 }
 0x11a   : > { %v661_v48 = vshrl.u32 %v4377_v50, %v652_v19  ;;  %v663_v49 = vshll.u32 %v4377_v50, %v651_v26  ;;  %v664_v51 = vshrl.u32 %v4383_v53, %v652_v19  ;;  %v656_v52 = vor.u32 %v655_v38, %v654_v42 }
 0x11b   : > { %v659_v54 = vor.u32 %v658_v46, %v657_v44  ;;  %v666_v55 = vshll.u32 %v4383_v53, %v651_v26  ;;  %v667_v57 = vshrl.u32 %v4385_v56, %v652_v19  ;;  %v468_v58 = vsel %vm462_vm5, %v465_v35, %v467_v36 }
 0x11c   : > { %v487_v59 = vadd.s32 1, %v2881_v14  ;;  %v662_v60 = vor.u32 %v661_v48, %v660_v28  ;;  %v665_v61 = vor.u32 %v664_v51, %v663_v49  ;;  %vm486_vm7 = vc.u32 %v2887_v25, %v2880_v13 }
 0x11d   : > { %v668_v62 = vor.u32 %v667_v57, %v666_v55  ;;  %vm669_vm8 = vcmp.lt.s32.totalorder %v650_v37, 1  ;;  %vm672_vm9 = vcmp.lt.s32.totalorder %v650_v37, 4  ;;  %vm671_vm10 = vcmp.lt.s32.totalorder %v650_v37, 3 }
 0x11e   : > { %v677_v63 = vsel %vm669_vm8, %v656_v52, %v659_v54  ;;  %v678_v0 = vsel %vm672_vm9, %v665_v61, 920167782  ;;  %v848_v1 = vand.u32 2139095040, %v2895_v33  ;;  %vm670_vm11 = vcmp.lt.s32.totalorder %v650_v37, 2 }
 0x11f   : > { %v679_v40 = vsel %vm671_vm10, %v662_v60, %v678_v0  ;;  %v681_v3 = vsel %vm669_vm8, %v659_v54, %v662_v60  ;;  %v682_v4 = vsel %vm672_vm9, %v668_v62, 1326507024  ;;  %v488_v5 = vsel %vm486_vm7, %v487_v59, %v2881_v14 }
 0x120   : > { %v680_v6 = vsel %vm670_vm11, %v677_v63, %v679_v40  ;;  %v683_v7 = vsel %vm671_vm10, %v665_v61, %v682_v4  ;;  %v484_v8 = vmul.u32 %v477_v11, %v468_v58  ;;  %v537_v17 = vshrl.u32 %v536_v16, 23 }
 0x121   : > { %v684_v9 = vsel %vm670_vm11, %v681_v3, %v683_v7  ;;  %v2929_v10 = vmul.u32.u64.low %v2901_v39, %v680_v6  ;;  %v2930_v15 = vmul.u32.u64.high %v2901_v39, %v680_v6, %v2929_v10  ;;  %v2939_v14 = vadd.f32 %v2828_v24, %v2822_v20 }
 0x122   : > { %v2934_v21 = vmul.u32.u64.low %v2901_v39, %v684_v9  ;;  %v2935_v22 = vmul.u32.u64.high %v2901_v39, %v684_v9, %v2934_v21  ;;  %v489_v26 = vadd.s32 %v488_v5, %v484_v8  ;;  %v849_v29 = vshrl.u32 %v848_v1, 23 }
 0x123   : > { %v674_v11 = vsel %vm672_vm9, %v662_v60, 2102212464  ;;  %v2351_v36 = vadd.s32 4294967169, %v537_v17  ;;  %v653_v42 = vshrl.u32 %v4373_v41, %v652_v19  ;;  %v744_v38 = vand.u32 2139095040, %v2939_v14 }
 0x124   : > { %v2363_v35 = vadd.s32 4294967169, %v849_v29  ;;  %v490_v44 = vadd.s32 536870912, %v489_v26  ;;  %v675_v28 = vsel %vm671_vm10, %v659_v54, %v674_v11  ;;  %v695_v48 = vadd.s32 1, %v2930_v15 }
 0x125   : > { %v673_v46 = vsel %vm669_vm8, %v653_v42, %v656_v52  ;;  %v543_v20 = vadd.s32 1, %v2351_v36  ;;  %vm694_vm13 = vc.u32 %v2935_v22, %v2929_v10  ;;  %v745_v24 = vshrl.u32 %v744_v38, 23 }
 0x126   : > { %v855_v16 = vadd.s32 1, %v2363_v35  ;;  %v2949_v51 = vshrl.u32 %v490_v44, 30  ;;  %v676_v19 = vsel %vm670_vm11, %v673_v46, %v675_v28  ;;  %v4369_v55 = vand.u32 2147483647, %v2895_v33 }
 0x127   : > { %v696_v52 = vsel %vm694_vm13, %v695_v48, %v2930_v15  ;;  %v2956_v54 = vadd.f32 %v2833_v30, %v2889_v27  ;;  %vm544_vm14 = vcmp.gt.s32.totalorder %v543_v20, 0  ;;  %v692_v59 = vmul.u32 %v2901_v39, %v676_v19 }
 0x128   : > { %vm856_vm12 = vcmp.gt.s32.totalorder %v855_v16, 0  ;;  %4420 = vst [vmem:[#allocation10_spill] sm:$0xff] %v2949_v51  ;;  %v2359_v60 = vadd.s32 4294967169, %v745_v24  ;;  %v492_v61 = vshll.u32 %v2949_v51, 30  ;;  %v852_v37 = vand.u32 8388607, %v4369_v55 }
 0x129   : > { %v857_v49 = vsel %vm856_vm12, %v855_v16, 0  ;;  %4421 = vst [vmem:[#allocation11_spill] sm:$0xff] %v2956_v54  ;;  %v2964_v0 = vadd.s32 %v696_v52, %v692_v59  ;;  %v952_v4 = vand.u32 2139095040, %v2956_v54  ;;  %v545_v5 = vsel %vm544_vm14, %v543_v20, 0 }
 0x12a   : > { %v859_v57 = vand.u32 31, %v857_v49  ;;  %v2973_v6 = vshrl.u32 %v857_v49, 5  ;;  %v2977_v29 = vsub.s32 %v489_v26, %v492_v61  ;;  %v4366_v35 = vand.u32 2147483647, %v2878_v12 }
 0x12b   : > { %v698_v11 = vadd.s32 536870912, %v2964_v0  ;;  %v751_v36 = vadd.s32 1, %v2359_v60  ;;  %v853_v42 = vor.u32 8388608, %v852_v37  ;;  %v953_v44 = vshrl.u32 %v952_v4, 23 }
 0x12c   : > { %v860_v58 = vsub.s32 32, %v859_v57  ;;  %v862_v1 = vshll.u32 %v4373_v41, %v859_v57  ;;  %v865_v30 = vshll.u32 %v4371_v43, %v859_v57  ;;  %v868_v39 = vshll.u32 %v4375_v47, %v859_v57 }
 0x12d   : > { %v871_v40 = vshll.u32 %v4377_v50, %v859_v57  ;;  %v874_v17 = vshll.u32 %v4383_v53, %v859_v57  ;;  %v2981_v16 = vand.u32 31, %v545_v5  ;;  %vm877_vm15 = vcmp.lt.s32.totalorder %v2973_v6, 1 }
 0x12e   : > { %v863_v62 = vshrl.u32 %v4371_v43, %v860_v58  ;;  %v866_v63 = vshrl.u32 %v4375_v47, %v860_v58  ;;  %v869_v27 = vshrl.u32 %v4377_v50, %v860_v58  ;;  %v872_v3 = vshrl.u32 %v4383_v53, %v860_v58 }
 0x12f   : > { %v875_v21 = vshrl.u32 %v4385_v56, %v860_v58  ;;  %vm879_vm0 = vcmp.lt.s32.totalorder %v2973_v6, 3  ;;  %vm880_vm1 = vcmp.lt.s32.totalorder %v2973_v6, 4  ;;  %v495_v20 = vsub.s32 0, %v2977_v29 }
 0x130   : > { %v864_v7 = vor.u32 %v863_v62, %v862_v1  ;;  %v867_v8 = vor.u32 %v866_v63, %v865_v30  ;;  %v870_v9 = vor.u32 %v869_v27, %v868_v39  ;;  %v873_v15 = vor.u32 %v872_v3, %v871_v40  ;;  %v3021_v3 = vpop.permute.xlu1 %346 }
 0x131   : > { %v876_v38 = vor.u32 %v875_v21, %v874_v17  ;;  %v2995_v24 = vshrl.u32 %v698_v11, 30  ;;  %vm878_vm2 = vcmp.lt.s32.totalorder %v2973_v6, 2  ;;  %v893_v57 = vshll.u32 %v853_v42, 8 }
 0x132   : > { %v885_v26 = vsel %vm877_vm15, %v864_v7, %v867_v8  ;;  %v886_v46 = vsel %vm880_vm1, %v873_v15, 920167782  ;;  %v889_v28 = vsel %vm877_vm15, %v867_v8, %v870_v9  ;;  %v2367_v52 = vadd.s32 4294967169, %v953_v44 }
 0x133   : > { %v890_v48 = vsel %vm880_vm1, %v876_v38, 1326507024  ;;  %4422 = vst [vmem:[#allocation12_spill] sm:$0xff] %v2995_v24  ;;  %v887_v49 = vsel %vm879_vm0, %v870_v9, %v886_v46  ;;  %vm752_vm3 = vcmp.gt.s32.totalorder %v751_v36, 0  ;;  %v3008_v61 = vand.u32 8388607, %v4366_v35 }
 0x134   : > { %v891_v19 = vsel %vm879_vm0, %v873_v15, %v890_v48  ;;  %v888_v59 = vsel %vm878_vm2, %v885_v26, %v887_v49  ;;  %v3011_v37 = vsub.s32 32, %v2981_v16  ;;  %v959_v1 = vadd.s32 1, %v2367_v52 }
 0x135   : > { %v892_v60 = vsel %vm878_vm2, %v889_v28, %v891_v19  ;;  %v2348_v30 = vmin.u32 %v495_v20, %v2977_v29  ;;  %v700_v27 = vshll.u32 %v2995_v24, 30  ;;  %v882_v39 = vsel %vm880_vm1, %v870_v9, 2102212464 }
 0x136   : > { %v3013_v62 = vmul.u32.u64.low %v893_v57, %v892_v60  ;;  %v3014_v63 = vmul.u32.u64.high %v893_v57, %v892_v60, %v3013_v62  ;;  %v4368_v40 = vand.u32 2147483647, %v2956_v54  ;;  %v861_v4 = vshrl.u32 %v4373_v41, %v860_v58 }
 0x137   : > { %v3024_v15 = vmul.u32.u64.low %v893_v57, %v888_v59  ;;  %v3025_v17 = vmul.u32.u64.high %v893_v57, %v888_v59, %v3024_v15  ;;  %vm960_vm4 = vcmp.gt.s32.totalorder %v959_v1, 0  ;;  %v3028_v21 = vshrl.u32 %v545_v5, 5 }
 0x138   : > { %v3032_v11 = vshll.u32 %v4377_v50, %v2981_v16  ;;  %v961_v42 = vsel %vm960_vm4, %v959_v1, 0  ;;  %v3036_v9 = vadd.f32 %v2835_v31, %v3021_v3  ;;  %v560_v38 = vshrl.u32 %v4383_v53, %v3011_v37 }
 0x139   : > { %v881_v58 = vsel %vm877_vm15, %v861_v4, %v864_v7  ;;  %v883_v44 = vsel %vm879_vm0, %v867_v8, %v882_v39  ;;  %v963_v5 = vand.u32 31, %v961_v42  ;;  %v497_v26 = vclz %v2348_v30 }
 0x13a   : > { %4423 = vst [vmem:[#allocation13_spill] sm:$0xff] %v3036_v9  ;;  %v3046_v46 = vshrl.u32 %v4385_v56, %v3011_v37  ;;  %v3049_v28 = vsel %vm752_vm3, %v751_v36, 0  ;;  %v956_v31 = vand.u32 8388607, %v4368_v40  ;;  %v3054_v48 = vsub.s32 %v2964_v0, %v700_v27 }
 0x13b   : > { %vm902_vm5 = vc.u32 %v3014_v63, %v3024_v15  ;;  %v903_v7 = vadd.s32 1, %v3025_v17  ;;  %v964_v8 = vsub.s32 32, %v963_v5  ;;  %v884_v20 = vsel %vm878_vm2, %v881_v58, %v883_v44 }
 0x13c   : > { %v962_v49 = vshrl.u32 %v961_v42, 5  ;;  %v966_v19 = vshll.u32 %v4373_v41, %v963_v5  ;;  %v1056_v36 = vand.u32 2139095040, %v3036_v9  ;;  %v969_v59 = vshll.u32 %v4371_v43, %v963_v5 }
 0x13d   : > { %v967_v52 = vshrl.u32 %v4371_v43, %v964_v8  ;;  %v970_v0 = vshrl.u32 %v4375_v47, %v964_v8  ;;  %v972_v60 = vshll.u32 %v4375_v47, %v963_v5  ;;  %v904_v62 = vsel %vm902_vm5, %v903_v7, %v3025_v17 }
 0x13e   : > { %v973_v1 = vshrl.u32 %v4377_v50, %v964_v8  ;;  %v975_v6 = vshll.u32 %v4377_v50, %v963_v5  ;;  %v976_v30 = vshrl.u32 %v4383_v53, %v964_v8  ;;  %v978_v4 = vshll.u32 %v4383_v53, %v963_v5 }
 0x13f   : > { %v968_v27 = vor.u32 %v967_v52, %v966_v19  ;;  %v971_v39 = vor.u32 %v970_v0, %v969_v59  ;;  %v979_v42 = vshrl.u32 %v4385_v56, %v964_v8  ;;  %v900_v58 = vmul.u32 %v893_v57, %v884_v20 }
 0x140   : > { %v957_v44 = vor.u32 8388608, %v956_v31  ;;  %v974_v2 = vor.u32 %v973_v1, %v972_v60  ;;  %v977_v45 = vor.u32 %v976_v30, %v975_v6  ;;  %v2349_v35 = vadd.s32 4294967294, %v497_v26 }
 0x141   : > { %v703_v32 = vsub.s32 0, %v3054_v48  ;;  %v980_v17 = vor.u32 %v979_v42, %v978_v4  ;;  %v1057_v7 = vshrl.u32 %v1056_v36, 23  ;;  %v3074_v40 = vadd.s32 %v904_v62, %v900_v58 }
 0x142   : > { %v965_v55 = vshrl.u32 %v4373_v41, %v964_v8  ;;  %vm981_vm6 = vcmp.lt.s32.totalorder %v962_v49, 1  ;;  %vm984_vm7 = vcmp.lt.s32.totalorder %v962_v49, 4  ;;  %vm983_vm8 = vcmp.lt.s32.totalorder %v962_v49, 3 }
 0x143   : > { %v986_v19 = vsel %vm984_vm7, %v974_v2, 2102212464  ;;  %v989_v5 = vsel %vm981_vm6, %v968_v27, %v971_v39  ;;  %v990_v52 = vsel %vm984_vm7, %v977_v45, 920167782  ;;  %vm982_vm9 = vcmp.lt.s32.totalorder %v962_v49, 2 }
 0x144   : > { %v991_v57 = vsel %vm983_vm8, %v974_v2, %v990_v52  ;;  %v993_v31 = vsel %vm981_vm6, %v971_v39, %v974_v2  ;;  %v997_v20 = vshll.u32 %v957_v44, 8  ;;  %v985_v59 = vsel %vm981_vm6, %v965_v55, %v968_v27 }
 0x145   : > { %v992_v26 = vsel %vm982_vm9, %v989_v5, %v991_v57  ;;  %v994_v0 = vsel %vm984_vm7, %v980_v17, 1326507024  ;;  %v2371_v60 = vadd.s32 4294967169, %v1057_v7  ;;  %v987_v36 = vsel %vm983_vm8, %v971_v39, %v986_v19 }
 0x146   : > { %v995_v62 = vsel %vm983_vm8, %v977_v45, %v994_v0  ;;  %v3078_v1 = vmul.u32.u64.low %v997_v20, %v992_v26  ;;  %v3079_v6 = vmul.u32.u64.high %v997_v20, %v992_v26, %v3078_v1  ;;  %v3084_v8 = vshll.u32 %v4383_v53, %v2981_v16 }
 0x147   : > { %v906_v30 = vadd.s32 536870912, %v3074_v40  ;;  %v996_v2 = vsel %vm982_vm9, %v993_v31, %v995_v62  ;;  %v1063_v4 = vadd.s32 1, %v2371_v60  ;;  %vm2350_vm10 = vcmp.lt.s32.totalorder %v2349_v35, 0 }
 0x148   : > { %v3089_v55 = vor.u32 %v560_v38, %v3032_v11  ;;  %v3091_v27 = vmul.u32.u64.low %v997_v20, %v996_v2  ;;  %v3092_v39 = vmul.u32.u64.high %v997_v20, %v996_v2, %v3091_v27  ;;  %v3097_v42 = vand.u32 31, %v3049_v28 }
 0x149   : > { %v988_v58 = vsel %vm982_vm9, %v985_v59, %v987_v36  ;;  %vm1064_vm11 = vcmp.gt.s32.totalorder %v1063_v4, 0  ;;  %v2356_v44 = vmin.u32 %v703_v32, %v3054_v48  ;;  %v1007_v17 = vadd.s32 1, %v3079_v6 }
 0x14a   : > { %v4370_v7 = vand.u32 2147483647, %v3036_v9  ;;  %v1065_v11 = vsel %vm1064_vm11, %v1063_v4, 0  ;;  %v3103_v38 = vsel %vm2350_vm10, 0, %v2349_v35  ;;  %vm568_vm12 = vcmp.lt.s32.totalorder %v3028_v21, 4 }
 0x14b   : > { %v3106_v19 = vshrl.u32 %v906_v30, 30  ;;  %v1067_v5 = vand.u32 31, %v1065_v11  ;;  %v3111_v49 = vsel %vm568_vm12, %v3089_v55, 920167782  ;;  %v3114_v52 = vshrl.u32 %v3049_v28, 5 }
 0x14c   : > { %v1004_v32 = vmul.u32 %v997_v20, %v988_v58  ;;  %vm1006_vm13 = vc.u32 %v3092_v39, %v3078_v1  ;;  %v485_v35 = vadd.s32 %v2880_v13, %v2887_v25  ;;  %v3121_v57 = vsub.s32 32, %v3097_v42 }
 0x14d   : > { %4424 = vst [vmem:[#allocation14_spill] sm:$0xff] %v3106_v19  ;;  %v1008_v31 = vsel %vm1006_vm13, %v1007_v17, %v3079_v6  ;;  %v1068_v59 = vsub.s32 32, %v1067_v5  ;;  %v505_v26 = vsub.s32 4294967266, %v3103_v38  ;;  %v705_v0 = vclz %v2356_v44 }
 0x14e   : > { %v1009_v60 = vadd.s32 %v1008_v31, %v1004_v32  ;;  %v1060_v28 = vand.u32 8388607, %v4370_v7  ;;  %v908_v20 = vshll.u32 %v3106_v19, 30  ;;  %v1070_v30 = vshll.u32 %v4373_v41, %v1067_v5 }
 0x14f   : > { %v1071_v36 = vshrl.u32 %v4371_v43, %v1068_v59  ;;  %v1074_v62 = vshrl.u32 %v4375_v47, %v1068_v59  ;;  %v1077_v13 = vshrl.u32 %v4377_v50, %v1068_v59  ;;  %v1073_v6 = vshll.u32 %v4371_v43, %v1067_v5 }
 0x150   : > { %v1010_v25 = vadd.s32 536870912, %v1009_v60  ;;  %v1080_v2 = vshrl.u32 %v4383_v53, %v1068_v59  ;;  %v1066_v4 = vshrl.u32 %v1065_v11, 5  ;;  %v1076_v27 = vshll.u32 %v4375_v47, %v1067_v5 }
 0x151   : > { %v1079_v58 = vshll.u32 %v4377_v50, %v1067_v5  ;;  %v3138_v44 = vadd.f32 %v2838_v34, %v3021_v3  ;;  %v768_v17 = vshrl.u32 %v4383_v53, %v3121_v57  ;;  %v1072_v31 = vor.u32 %v1071_v36, %v1070_v30 }
 0x152   : > { %v3142_v32 = vshrl.u32 %v1010_v25, 30  ;;  %v1075_v7 = vor.u32 %v1074_v62, %v1073_v6  ;;  %v1078_v45 = vor.u32 %v1077_v13, %v1076_v27  ;;  %v1082_v41 = vshll.u32 %v4383_v53, %v1067_v5 }
 0x153   : > { %4425 = vst [vmem:[#allocation15_spill] sm:$0xff] %v3138_v44  ;;  %v1081_v43 = vor.u32 %v1080_v2, %v1079_v58  ;;  %v1083_v11 = vshrl.u32 %v4385_v56, %v1068_v59  ;;  %v501_v47 = vsub.s32 32, %v3103_v38  ;;  %v506_v50 = vadd.s32 127, %v505_v26 }
 0x154   : > { %4426 = vst [vmem:[#allocation16_spill] sm:$0xff] %v3142_v32  ;;  %v3148_v19 = vsub.s32 %v3074_v40, %v908_v20  ;;  %v1061_v34 = vor.u32 8388608, %v1060_v28  ;;  %v2357_v3 = vadd.s32 4294967294, %v705_v0  ;;  %vm1085_vm14 = vcmp.lt.s32.totalorder %v1066_v4, 1 }
 0x155   : > { %v1084_v24 = vor.u32 %v1083_v11, %v1082_v41  ;;  %v1160_v25 = vand.u32 2139095040, %v3138_v44  ;;  %v1012_v36 = vshll.u32 %v3142_v32, 30  ;;  %v4427_v62 = vmov 683565275  }
 0x156   : > { %v1069_v13 = vshrl.u32 %v4427_v62, %v1068_v59  ;;  %vm1088_vm15 = vcmp.lt.s32.totalorder %v1066_v4, 4  ;;  %v1093_v5 = vsel %vm1085_vm14, %v1072_v31, %v1075_v7  ;;  %v1097_v2 = vsel %vm1085_vm14, %v1075_v7, %v1078_v45 }
 0x157   : > { %v1090_v30 = vsel %vm1088_vm15, %v1078_v45, 2102212464  ;;  %v1094_v6 = vsel %vm1088_vm15, %v1081_v43, 920167782  ;;  %v1098_v27 = vsel %vm1088_vm15, %v1084_v24, 1326507024  ;;  %v3154_v58 = vsub.s32 %v1009_v60, %v1012_v36 }
 0x158   : > { %v911_v26 = vsub.s32 0, %v3148_v19  ;;  %vm1086_vm0 = vcmp.lt.s32.totalorder %v1066_v4, 2  ;;  %vm1087_vm1 = vcmp.lt.s32.totalorder %v1066_v4, 3  ;;  %v1101_v40 = vshll.u32 %v1061_v34, 8 }
 0x159   : > { %v1089_v0 = vsel %vm1085_vm14, %v1069_v13, %v1072_v31  ;;  %v1095_v41 = vsel %vm1087_vm1, %v1078_v45, %v1094_v6  ;;  %v1099_v28 = vsel %vm1087_vm1, %v1081_v43, %v1098_v27  ;;  %v1161_v20 = vshrl.u32 %v1160_v25, 23 }
 0x15a   : > { %v1091_v11 = vsel %vm1087_vm1, %v1075_v7, %v1090_v30  ;;  %v1096_v59 = vsel %vm1086_vm0, %v1093_v5, %v1095_v41  ;;  %v1100_v53 = vsel %vm1086_vm0, %v1097_v2, %v1099_v28  ;;  %v503_v51 = vshrl.u32 %v485_v35, %v501_v47 }
 0x15b   : > { %v3158_v56 = vmul.u32.u64.low %v1101_v40, %v1100_v53  ;;  %v3159_v32 = vmul.u32.u64.high %v1101_v40, %v1100_v53, %v3158_v56  ;;  %v3161_v24 = vmul.u32.u64.low %v1101_v40, %v1096_v59  ;;  %v3162_v9 = vmul.u32.u64.high %v1101_v40, %v1096_v59, %v3161_v24 }
 0x15c   : > { %v507_v34 = vshll.u32 %v506_v50, 23  ;;  %v4429_v45 = vmov 1326507024   ;;  %v2375_v31 = vadd.s32 4294967169, %v1161_v20  ;;  %v502_v7 = vshll.u32 %v2977_v29, %v3103_v38 }
 0x15d   : > { %4428 = vst [vmem:[#allocation17_spill] sm:$0xff] %v3161_v24  ;;  %v771_v43 = vshrl.u32 %v4429_v45, %v3121_v57  ;;  %v4430_v60 = vmov 2102212464   ;;  %v4431_v36 = vmov 920167782   ;;  %v2364_v56 = vmin.u32 %v911_v26, %v3148_v19 }
 0x15e   : > { %v767_v25 = vshll.u32 %v4430_v60, %v3097_v42  ;;  %v770_v53 = vshll.u32 %v4431_v36, %v3097_v42  ;;  %v1015_v13 = vsub.s32 0, %v3154_v58  ;;  %v1092_v47 = vsel %vm1086_vm0, %v1089_v0, %v1091_v11 }
 0x15f   : > { %v4393_v50 = vand.u32 2147483647, %v3138_v44  ;;  %v1167_v35 = vadd.s32 1, %v2375_v31  ;;  %vm2358_vm2 = vcmp.lt.s32.totalorder %v2357_v3, 0  ;;  %vm1110_vm3 = vc.u32 %v3159_v32, %v3161_v24 }
 0x160   : > { %v3177_v5 = vor.u32 %v768_v17, %v767_v25  ;;  %v1111_v29 = vadd.s32 1, %v3162_v9  ;;  %v3182_v38 = vor.u32 %v503_v51, %v502_v7  ;;  %v3184_v30 = vor.u32 4788187, %v507_v34 }
 0x161   : > { %v772_v6 = vor.u32 %v771_v43, %v770_v53  ;;  %vm1168_vm4 = vcmp.gt.s32.totalorder %v1167_v35, 0  ;;  %v913_v2 = vclz %v2364_v56  ;;  %v1108_v4 = vmul.u32 %v1101_v40, %v1092_v47 }
 0x162   : > { %v1112_v27 = vsel %vm1110_vm3, %v1111_v29, %v3162_v9  ;;  %v1169_v26 = vsel %vm1168_vm4, %v1167_v35, 0  ;;  %v4432_v17 = vor.u32 %v3046_v46, %v3084_v8  ;;  %v3194_v41 = vsel %vm2358_vm2, 0, %v2357_v3 }
 0x163   : > { %v2368_v51 = vmin.u32 %v1015_v13, %v3154_v58  ;;  %v1164_v28 = vand.u32 8388607, %v4393_v50  ;;  %v3201_v40 = vadd.s32 %v2929_v10, %v2935_v22  ;;  %vm776_vm5 = vcmp.lt.s32.totalorder %v3114_v52, 4 }
 0x164   : > { %v3192_v0 = vsel %vm568_vm12, %v4432_v17, 1326507024  ;;  %v1113_v9 = vadd.s32 %v1112_v27, %v1108_v4  ;;  %v1171_v20 = vand.u32 31, %v1169_v26  ;;  %v3209_v3 = vsel %vm776_vm5, %v3177_v5, 920167782 }
 0x165   : > { %v3213_v11 = vsel %vm776_vm5, %v772_v6, 1326507024  ;;  %v709_v10 = vsub.s32 32, %v3194_v41  ;;  %v3216_v22 = vadd.s32 4294967294, %v913_v2  ;;  %v1017_v43 = vclz %v2368_v51 }
 0x166   : > { %v1114_v59 = vadd.s32 536870912, %v1113_v9  ;;  %v1172_v34 = vsub.s32 32, %v1171_v20  ;;  %v1165_v31 = vor.u32 8388608, %v1164_v28  ;;  %v1170_v7 = vshrl.u32 %v1169_v26, 5 }
 0x167   : > { %v1174_v25 = vshll.u32 %v4427_v62, %v1171_v20  ;;  %v4434_v56 = vmov 2475754826   ;;  %v4435_v35 = vmov 2131351028   ;;  %v1183_v4 = vshll.u32 %v4430_v60, %v1171_v20 }
 0x168   : > { %v3219_v53 = vshrl.u32 %v1114_v59, 30  ;;  %v1175_v13 = vshrl.u32 %v4434_v56, %v1172_v34  ;;  %v1177_v47 = vshll.u32 %v4434_v56, %v1171_v20  ;;  %v1178_v29 = vshrl.u32 %v4435_v35, %v1172_v34 }
 0x169   : > { %v1180_v6 = vshll.u32 %v4435_v35, %v1171_v20  ;;  %v1181_v2 = vshrl.u32 %v4430_v60, %v1172_v34  ;;  %v1184_v27 = vshrl.u32 %v4431_v36, %v1172_v34  ;;  %v550_v28 = vshll.u32 %v4427_v62, %v2981_v16 }
 0x16a   : > { %4433 = vst [vmem:[#allocation18_spill] sm:$0xff] %v3219_v53  ;;  %v1116_v26 = vshll.u32 %v3219_v53, 30  ;;  %v1176_v17 = vor.u32 %v1175_v13, %v1174_v25  ;;  %v1179_v51 = vor.u32 %v1178_v29, %v1177_v47  ;;  %vm2366_vm6 = vcmp.lt.s32.totalorder %v3216_v22, 0 }
 0x16b   : > { %v1182_v59 = vor.u32 %v1181_v2, %v1180_v6  ;;  %v1185_v50 = vor.u32 %v1184_v27, %v1183_v4  ;;  %v1186_v8 = vshll.u32 %v4431_v36, %v1171_v20  ;;  %v1187_v46 = vshrl.u32 %v4429_v45, %v1172_v34 }
 0x16c   : > { %v1205_v44 = vshll.u32 %v1165_v31, 8  ;;  %v551_v12 = vshrl.u32 %v4434_v56, %v3011_v37  ;;  %v553_v53 = vshll.u32 %v4434_v56, %v2981_v16  ;;  %v554_v25 = vshrl.u32 %v4435_v35, %v3011_v37 }
 0x16d   : > { %v1173_v13 = vshrl.u32 %v4427_v62, %v1172_v34  ;;  %v1188_v47 = vor.u32 %v1187_v46, %v1186_v8  ;;  %vm1189_vm7 = vcmp.lt.s32.totalorder %v1170_v7, 1  ;;  %vm1192_vm8 = vcmp.lt.s32.totalorder %v1170_v7, 4 }
 0x16e   : > { %vm1191_vm9 = vcmp.lt.s32.totalorder %v1170_v7, 3  ;;  %v1194_v29 = vsel %vm1192_vm8, %v1182_v59, 2102212464  ;;  %v1197_v20 = vsel %vm1189_vm7, %v1176_v17, %v1179_v51  ;;  %v1198_v6 = vsel %vm1192_vm8, %v1185_v50, 920167782 }
 0x16f   : > { %v3241_v2 = vsub.s32 %v1113_v9, %v1116_v26  ;;  %vm1190_vm10 = vcmp.lt.s32.totalorder %v1170_v7, 2  ;;  %v1199_v31 = vsel %vm1191_vm9, %v1182_v59, %v1198_v6  ;;  %v1201_v4 = vsel %vm1189_vm7, %v1179_v51, %v1182_v59 }
 0x170   : > { %v1193_v27 = vsel %vm1189_vm7, %v1173_v13, %v1176_v17  ;;  %v1195_v45 = vsel %vm1191_vm9, %v1179_v51, %v1194_v29  ;;  %v1200_v36 = vsel %vm1190_vm10, %v1197_v20, %v1199_v31  ;;  %v1202_v54 = vsel %vm1192_vm8, %v1188_v47, 1326507024 }
 0x171   : > { %v2369_v33 = vadd.s32 4294967294, %v1017_v43  ;;  %v1203_v23 = vsel %vm1191_vm9, %v1185_v50, %v1202_v54  ;;  %v3243_v18 = vmul.u32.u64.low %v1205_v44, %v1200_v36  ;;  %v3244_v34 = vmul.u32.u64.high %v1205_v44, %v1200_v36, %v3243_v18 }
 0x172   : > { %v1204_v46 = vsel %vm1190_vm10, %v1201_v4, %v1203_v23  ;;  %v552_v8 = vor.u32 %v551_v12, %v550_v28  ;;  %v555_v24 = vor.u32 %v554_v25, %v553_v53  ;;  %v556_v9 = vshll.u32 %v4435_v35, %v2981_v16 }
 0x173   : > { %v1196_v26 = vsel %vm1190_vm10, %v1193_v27, %v1195_v45  ;;  %v3249_v7 = vmul.u32.u64.low %v1205_v44, %v1204_v46  ;;  %v3250_v6 = vmul.u32.u64.high %v1205_v44, %v1204_v46, %v3249_v7  ;;  %v557_v17 = vshrl.u32 %v4430_v60, %v3011_v37 }
 0x174   : > { %v710_v54 = vshll.u32 %v3054_v48, %v3194_v41  ;;  %v711_v36 = vshrl.u32 %v3201_v40, %v709_v10  ;;  %v713_v50 = vsub.s32 4294967266, %v3194_v41  ;;  %v1119_v23 = vsub.s32 0, %v3241_v2 }
 0x175   : > { %v1215_v12 = vadd.s32 1, %v3244_v34  ;;  %v541_v16 = vor.u32 8388608, %v3008_v61  ;;  %v549_v45 = vshrl.u32 %v4427_v62, %v3011_v37  ;;  %v558_v43 = vor.u32 %v557_v17, %v556_v9 }
 0x176   : > { %v3266_v53 = vsel %vm2366_vm6, 0, %v3216_v22  ;;  %vm2370_vm11 = vcmp.lt.s32.totalorder %v2369_v33, 0  ;;  %v1212_v48 = vmul.u32 %v1205_v44, %v1196_v26  ;;  %vm565_vm13 = vcmp.lt.s32.totalorder %v3028_v21, 1 }
 0x177   : > { %vm1214_vm14 = vc.u32 %v3250_v6, %v3243_v18  ;;  %vm567_vm15 = vcmp.lt.s32.totalorder %v3028_v21, 3  ;;  %v570_v61 = vsel %vm568_vm12, %v558_v43, 2102212464  ;;  %v573_v41 = vsel %vm565_vm13, %v552_v8, %v555_v24 }
 0x178   : > { %v2372_v37 = vmin.u32 %v1119_v23, %v3241_v2  ;;  %v1216_v40 = vsel %vm1214_vm14, %v1215_v12, %v3244_v34  ;;  %vm566_vm0 = vcmp.lt.s32.totalorder %v3028_v21, 2  ;;  %v579_v44 = vsel %vm567_vm15, %v3089_v55, %v3192_v0 }
 0x179   : > { %v1217_v10 = vadd.s32 %v1216_v40, %v1212_v48  ;;  %v575_v22 = vsel %vm567_vm15, %v558_v43, %v3111_v49  ;;  %v577_v51 = vsel %vm565_vm13, %v555_v24, %v558_v43  ;;  %v581_v28 = vshll.u32 %v541_v16, 8 }
 0x17a   : > { %v921_v59 = vsub.s32 4294967266, %v3266_v53  ;;  %v569_v25 = vsel %vm565_vm13, %v549_v45, %v552_v8  ;;  %v571_v13 = vsel %vm567_vm15, %v555_v24, %v570_v61  ;;  %v576_v47 = vsel %vm566_vm0, %v573_v41, %v575_v22 }
 0x17b   : > { %v1218_v29 = vadd.s32 536870912, %v1217_v10  ;;  %v580_v20 = vsel %vm566_vm0, %v577_v51, %v579_v44  ;;  %v3285_v31 = vmul.u32.u64.low %v581_v28, %v576_v47  ;;  %v3286_v4 = vmul.u32.u64.high %v581_v28, %v576_v47, %v3285_v31 }
 0x17c   : > { %v3290_v55 = vsel %vm2370_vm11, 0, %v2369_v33  ;;  %v1121_v49 = vclz %v2372_v37  ;;  %v3292_v0 = vmul.u32.u64.low %v581_v28, %v580_v20  ;;  %v3293_v27 = vmul.u32.u64.high %v581_v28, %v580_v20, %v3292_v0 }
 0x17d   : > { %v4436_v24 = vand.u32 2147483647, %v3184_v30  ;;  %v4437_v34 = vcvt.s32.f32 %v3182_v38  ;;  %v917_v8 = vsub.s32 32, %v3266_v53  ;;  %v3302_v9 = vshrl.u32 %v1218_v29, 30 }
 0x17e   : > { %v572_v26 = vsel %vm566_vm0, %v569_v25, %v571_v13  ;;  %v3306_v7 = vor.u32 %v711_v36, %v710_v54  ;;  %v3308_v33 = vadd.s32 127, %v713_v50  ;;  %v901_v17 = vadd.s32 %v3024_v15, %v3014_v63 }
 0x17f   : > { %v3299_v46 = vmul.f32 %v4437_v34, %v4436_v24  ;;  %v922_v23 = vadd.s32 127, %v921_v59  ;;  %v918_v38 = vshll.u32 %v3148_v19, %v3266_v53  ;;  %v1025_v30 = vsub.s32 4294967266, %v3290_v55 }
 0x180   : > { %v1220_v12 = vshll.u32 %v3302_v9, 30  ;;  %v591_v16 = vadd.s32 1, %v3286_v4  ;;  %v2373_v45 = vadd.s32 4294967294, %v1121_v49  ;;  %v588_v21 = vmul.u32 %v581_v28, %v572_v26 }
 0x181   : > { %vm590_vm12 = vc.u32 %v3293_v27, %v3285_v31  ;;  %v741_v54 = vand.u32 2147483647, %v2939_v14  ;;  %v919_v36 = vshrl.u32 %v901_v17, %v917_v8  ;;  %v759_v15 = vshrl.u32 %v4434_v56, %v3121_v57 }
 0x182   : > { %v3320_v50 = vsub.s32 %v1217_v10, %v1220_v12  ;;  %v592_v63 = vsel %vm590_vm12, %v591_v16, %v3286_v4  ;;  %v923_v19 = vshll.u32 %v922_v23, 23  ;;  %v758_v53 = vshll.u32 %v4427_v62, %v3097_v42 }
 0x183   : > { %v593_v43 = vadd.s32 %v592_v63, %v588_v21  ;;  %v762_v48 = vshrl.u32 %v4435_v35, %v3121_v57  ;;  %v761_v41 = vshll.u32 %v4434_v56, %v3097_v42  ;;  %v764_v37 = vshll.u32 %v4435_v35, %v3097_v42 }
 0x184   : > { %v1223_v61 = vsub.s32 0, %v3320_v50  ;;  %v765_v40 = vshrl.u32 %v4430_v60, %v3121_v57  ;;  %v1026_v44 = vadd.s32 127, %v1025_v30  ;;  %vm2374_vm1 = vcmp.lt.s32.totalorder %v2373_v45, 0 }
 0x185   : > { %v594_v10 = vadd.s32 536870912, %v593_v43  ;;  %v748_v22 = vand.u32 8388607, %v741_v54  ;;  %v760_v28 = vor.u32 %v759_v15, %v758_v53  ;;  %v763_v59 = vor.u32 %v762_v48, %v761_v41 }
 0x186   : > { %v2376_v51 = vmin.u32 %v1223_v61, %v3320_v50  ;;  %v766_v25 = vor.u32 %v765_v40, %v764_v37  ;;  %v715_v13 = vshll.u32 %v3308_v33, 23  ;;  %v920_v47 = vor.u32 %v919_v36, %v918_v38 }
 0x187   : > { %v924_v29 = vor.u32 4788187, %v923_v19  ;;  %v3340_v20 = vshrl.u32 %v594_v10, 30  ;;  %v1021_v42 = vsub.s32 32, %v3290_v55  ;;  %v3343_v4 = vsel %vm2374_vm1, 0, %v2373_v45 }
 0x188   : > { %v1225_v49 = vclz %v2376_v51  ;;  %vm775_vm2 = vcmp.lt.s32.totalorder %v3114_v52, 3  ;;  %v749_v24 = vor.u32 8388608, %v748_v22  ;;  %vm773_vm3 = vcmp.lt.s32.totalorder %v3114_v52, 1 }
 0x189   : > { %v596_v0 = vshll.u32 %v3340_v20, 30  ;;  %v787_v34 = vsel %vm775_vm2, %v3177_v5, %v3213_v11  ;;  %v1027_v8 = vshll.u32 %v1026_v44, 23  ;;  %v781_v33 = vsel %vm773_vm3, %v760_v28, %v763_v59 }
 0x18a   : > { %v2377_v26 = vadd.s32 4294967294, %v1225_v49  ;;  %v783_v17 = vsel %vm775_vm2, %v766_v25, %v3209_v3  ;;  %vm774_vm4 = vcmp.lt.s32.totalorder %v3114_v52, 2  ;;  %v778_v38 = vsel %vm776_vm5, %v766_v25, 2102212464 }
 0x18b   : > { %v3357_v23 = vsub.s32 %v593_v43, %v596_v0  ;;  %v785_v30 = vsel %vm773_vm3, %v763_v59, %v766_v25  ;;  %v1129_v5 = vsub.s32 4294967266, %v3343_v4  ;;  %v757_v11 = vshrl.u32 %v4427_v62, %v3121_v57 }
 0x18c   : > { %vm2378_vm6 = vcmp.lt.s32.totalorder %v2377_v26, 0  ;;  %v788_v12 = vsel %vm774_vm4, %v785_v30, %v787_v34  ;;  %v784_v45 = vsel %vm774_vm4, %v781_v33, %v783_v17  ;;  %v789_v21 = vshll.u32 %v749_v24, 8  ;;  %v4439_v33 = vld [vmem:[#allocation6_spill] sm:$0xff] }
 0x18d   : > { %v3369_v3 = vsel %vm2378_vm6, 0, %v2377_v26  ;;  %v599_v16 = vsub.s32 0, %v3357_v23  ;;  %v925_v36 = vand.u32 2147483647, %v924_v29  ;;  %v1005_v63 = vadd.s32 %v3078_v1, %v3092_v39 }
 0x18e   : > { %v777_v15 = vsel %vm773_vm3, %v757_v11, %v760_v28  ;;  %v779_v57 = vsel %vm775_vm2, %v763_v59, %v778_v38  ;;  %v1233_v19 = vsub.s32 4294967266, %v3369_v3  ;;  %v1130_v41 = vadd.s32 127, %v1129_v5 }
 0x18f   : > { %v2352_v43 = vmin.u32 %v599_v16, %v3357_v23  ;;  %v3382_v53 = vmul.u32.u64.low %v789_v21, %v788_v12  ;;  %v3383_v48 = vmul.u32.u64.high %v789_v21, %v788_v12, %v3382_v53  ;;  %v1023_v61 = vshrl.u32 %v1005_v63, %v1021_v42 }
 0x190   : > { %v3385_v37 = vmul.u32.u64.low %v789_v21, %v784_v45  ;;  %v3386_v40 = vmul.u32.u64.high %v789_v21, %v784_v45, %v3385_v37  ;;  %v716_v1 = vor.u32 4788187, %v715_v13  ;;  %v927_v39 = vcvt.s32.f32 %v920_v47  ;;  %v4438_v47 = vld [vmem:[#allocation17_spill] sm:$0xff] }
 0x191   : > { %v1028_v44 = vor.u32 4788187, %v1027_v8  ;;  %v601_v10 = vclz %v2352_v43  ;;  %v719_v22 = vcvt.s32.f32 %v3306_v7  ;;  %v1022_v51 = vshll.u32 %v3154_v58, %v3290_v55 }
 0x192   : > { %v1125_v28 = vsub.s32 32, %v3343_v4  ;;  %v780_v59 = vsel %vm774_vm4, %v777_v15, %v779_v57  ;;  %v928_v25 = vmul.f32 %v927_v39, %v925_v36  ;;  %v1234_v29 = vadd.s32 127, %v1233_v19 }
 0x193   : > { %v2353_v42 = vadd.s32 4294967294, %v601_v10  ;;  %vm798_vm5 = vc.u32 %v3383_v48, %v3385_v37  ;;  %v1024_v13 = vor.u32 %v1023_v61, %v1022_v51  ;;  %v1109_v49 = vadd.s32 %v4438_v47, %v3159_v32 }
 0x194   : > { %v1131_v0 = vshll.u32 %v1130_v41, 23  ;;  %v799_v7 = vadd.s32 1, %v3386_v40  ;;  %v1029_v24 = vand.u32 2147483647, %v1028_v44  ;;  %v1229_v58 = vsub.s32 32, %v3369_v3  ;;  %v4441_v44 = vld [vmem:[#allocation9_spill] sm:$0xff] }
 0x195   : > { %vm2354_vm7 = vcmp.lt.s32.totalorder %v2353_v42, 0  ;;  %v796_v55 = vmul.u32 %v789_v21, %v780_v59  ;;  %v1127_v52 = vshrl.u32 %v1109_v49, %v1125_v28  ;;  %v1213_v34 = vadd.s32 %v3243_v18, %v3250_v6  ;;  %v4446_v49 = vld [vmem:[#allocation8_spill] sm:$0xff] }
 0x196   : > { %v604_v8 = vsel %vm2354_vm7, 0, %v2353_v42  ;;  %v800_v26 = vsel %vm798_vm5, %v799_v7, %v3386_v40  ;;  %vm431_vm8 = vcmp.lt.s32.totalorder %v4439_v33, 0  ;;  %v1235_v17 = vshll.u32 %v1234_v29, 23 }
 0x197   : > { %v605_v38 = vsub.s32 32, %v604_v8  ;;  %v609_v32 = vsub.s32 4294967266, %v604_v8  ;;  %v801_v30 = vadd.s32 %v800_v26, %v796_v55  ;;  %v717_v5 = vand.u32 2147483647, %v716_v1 }
 0x198   : > { %v1031_v11 = vcvt.s32.f32 %v1024_v13  ;;  %v1126_v12 = vshll.u32 %v3241_v2, %v3343_v4  ;;  %v1132_v16 = vor.u32 4788187, %v1131_v0  ;;  %v1231_v45 = vshrl.u32 %v1213_v34, %v1229_v58  ;;  %v4440_v4 = vld [vmem:[#allocation7_spill] sm:$0xff]  ;;  %v4469_v34 = vld [vmem:[#allocation16_spill] sm:$0xff] }
 0x199   : > { %v589_v21 = vadd.s32 %v3285_v31, %v3293_v27  ;;  %v610_v18 = vadd.s32 127, %v609_v32  ;;  %v802_v6 = vadd.s32 536870912, %v801_v30  ;;  %v929_v36 = vxor.u32 2147483648, %v928_v25  ;;  %v4445_v13 = vld [vmem:[#allocation11_spill] sm:$0xff] }
 0x19a   : > { %v1032_v63 = vmul.f32 %v1031_v11, %v1029_v24  ;;  %v1128_v15 = vor.u32 %v1127_v52, %v1126_v12  ;;  %v1230_v57 = vshll.u32 %v3320_v50, %v3369_v3  ;;  %v1236_v19 = vor.u32 4788187, %v1235_v17 }
 0x19b   : > { %v607_v43 = vshrl.u32 %v589_v21, %v605_v38  ;;  %v611_v53 = vshll.u32 %v610_v18, 23  ;;  %v3411_v61 = vshrl.u32 %v802_v6, 30  ;;  %v513_v2 = vxor.u32 2147483648, %v3299_v46 }
 0x19c   : > { %vm639_vm9 = vcmp.lt.s32.totalorder %v4440_v4, 0  ;;  %v720_v41 = vmul.f32 %v719_v22, %v717_v5  ;;  %v1133_v40 = vand.u32 2147483647, %v1132_v16  ;;  %v1232_v31 = vor.u32 %v1231_v45, %v1230_v57  ;;  %v4457_v16 = vld [vmem:[#allocation13_spill] sm:$0xff]  ;;  %v4461_v57 = vld [vmem:[#allocation15_spill] sm:$0xff] }
 0x19d   : > { %v606_v27 = vshll.u32 %v3357_v23, %v604_v8  ;;  %v612_v1 = vor.u32 4788187, %v611_v53  ;;  %v804_v39 = vshll.u32 %v3411_v61, 30  ;;  %v4442_v10 = vand.u32 2147483647, %v4441_v44  ;;  %v4453_v8 = vld [vmem:[#allocation10_spill] sm:$0xff] }
 0x19e   : > { %vm847_vm11 = vcmp.lt.s32.totalorder %v4441_v44, 0  ;;  %v1033_v3 = vxor.u32 2147483648, %v1032_v63  ;;  %v1135_v51 = vcvt.s32.f32 %v1128_v15  ;;  %v1237_v28 = vand.u32 2147483647, %v1236_v19 }
 0x19f   : > { %vm3419_vm10 = vcmp.le.f32.partialorder %v4442_v10, 0.7853982  ;;  %v930_v22 = vsel %vm847_vm11, %v929_v36, %v928_v25  ;;  %v608_v59 = vor.u32 %v607_v43, %v606_v27  ;;  %v3426_v29 = vsub.s32 %v801_v30, %v804_v39 }
 0x1a0   : > { %v514_v23 = vsel %vm431_vm8, %v513_v2, %v3299_v46  ;;  %v721_v42 = vxor.u32 2147483648, %v720_v41  ;;  %vm951_vm13 = vcmp.lt.s32.totalorder %v4445_v13, 0  ;;  %v1136_v47 = vmul.f32 %v1135_v51, %v1133_v40 }
 0x1a1   : > { %vm535_vm14 = vcmp.lt.s32.totalorder %v4446_v49, 0  ;;  %v4447_v0 = vand.u32 2147483647, %v4445_v13  ;;  %v1239_v25 = vcvt.s32.f32 %v1232_v31  ;;  %v613_v24 = vand.u32 2147483647, %v612_v1 }
 0x1a2   : > { %v807_v58 = vsub.s32 0, %v3426_v29  ;;  %v933_v46 = vsel %vm3419_vm10, %v4441_v44, %v930_v22  ;;  %v1034_v55 = vsel %vm951_vm13, %v1033_v3, %v1032_v63  ;;  %v4450_v52 = vand.u32 2147483647, %v4439_v33 }
 0x1a3   : > { %vm3435_vm15 = vcmp.le.f32.partialorder %v4447_v0, 0.7853982  ;;  %v515_v26 = vsub.s32 4, %v4453_v8  ;;  %v1240_v17 = vmul.f32 %v1239_v25, %v1237_v28  ;;  %v4454_v38 = vand.u32 2147483647, %v4446_v49  ;;  %v4468_v28 = vld [vmem:[#allocation12_spill] sm:$0xff] }
 0x1a4   : > { %vm3447_vm0 = vcmp.le.f32.partialorder %v4450_v52, 0.7853982  ;;  %v615_v30 = vcvt.s32.f32 %v608_v59  ;;  %v2360_v5 = vmin.u32 %v807_v58, %v3426_v29  ;;  %v722_v12 = vsel %vm639_vm9, %v721_v42, %v720_v41 }
 0x1a5   : > { %vm3454_vm12 = vcmp.le.f32.partialorder %v4454_v38, 0.7853982  ;;  %v517_v11 = vsel %vm3447_vm0, %v4439_v33, %v514_v23  ;;  %v4458_v45 = vand.u32 2147483647, %v4457_v16  ;;  %vm1055_vm2 = vcmp.lt.s32.totalorder %v4457_v16, 0 }
 0x1a6   : > { %v1137_v18 = vxor.u32 2147483648, %v1136_v47  ;;  %2542 = vcosq.f32 %v933_v46  ;;  %v616_v6 = vmul.f32 %v615_v30, %v613_v24  ;;  %v619_v36 = vsub.s32 4, %v3340_v20 }
 0x1a7   : > { %vm3466_vm1 = vcmp.le.f32.partialorder %v4458_v45, 0.7853982  ;;  %v809_v63 = vclz %v2360_v5  ;;  %v1037_v15 = vsel %vm3435_vm15, %v4445_v13, %v1034_v55  ;;  %vm1159_vm3 = vcmp.lt.s32.totalorder %v4461_v57, 0 }
 0x1a8   : > { %v516_v19 = vsel %vm431_vm8, %v515_v26, %v4453_v8  ;;  %2544 = vcosq.f32 %v517_v11  ;;  %v1241_v43 = vxor.u32 2147483648, %v1240_v17  ;;  %v4462_v2 = vand.u32 2147483647, %v4440_v4 }
 0x1a9   : > { %v2361_v53 = vadd.s32 4294967294, %v809_v63  ;;  %2546 = vsinq.f32 %v517_v11  ;;  %v1138_v40 = vsel %vm1055_vm2, %v1137_v18, %v1136_v47  ;;  %v4465_v31 = vand.u32 2147483647, %v4461_v57 }
 0x1aa   : > { %vm3481_vm4 = vcmp.le.f32.partialorder %v4462_v2, 0.7853982  ;;  %2548 = vsinq.f32 %v933_v46  ;;  %v617_v39 = vxor.u32 2147483648, %v616_v6  ;;  %v620_v10 = vsel %vm535_vm14, %v619_v36, %v3340_v20 }
 0x1ab   : > { %vm3489_vm6 = vcmp.le.f32.partialorder %v4465_v31, 0.7853982  ;;  %v725_v1 = vsel %vm3481_vm4, %v4440_v4, %v722_v12  ;;  %vm2362_vm5 = vcmp.lt.s32.totalorder %v2361_v53, 0  ;;  %v518_v3 = vsel %vm3447_vm0, 0, %v516_v19 }
 0x1ac   : > { %2550 = vcosq.f32 %v1037_v15  ;;  %v797_v51 = vadd.s32 %v3385_v37, %v3383_v48  ;;  %v812_v22 = vsel %vm2362_vm5, 0, %v2361_v53  ;;  %v723_v59 = vsub.s32 4, %v4468_v28 }
 0x1ad   : > { %v1242_v23 = vsel %vm1159_vm3, %v1241_v43, %v1240_v17  ;;  %v813_v42 = vsub.s32 32, %v812_v22  ;;  %v817_v47 = vsub.s32 4294967266, %v812_v22  ;;  %2552 = vcosq.f32 %v725_v1 }
 0x1ae   : > { %v1141_v20 = vsel %vm3466_vm1, %v4457_v16, %v1138_v40  ;;  %v622_v0 = vsel %vm3454_vm12, 0, %v620_v10  ;;  %v522_v25 = vadd.s32 3, %v518_v3  ;;  %2554 = vsinq.f32 %v725_v1  ;;  %v4472_v10 = vld [vmem:[#allocation18_spill] sm:$0xff] }
 0x1af   : > { %v618_v48 = vsel %vm535_vm14, %v617_v39, %v616_v6  ;;  %v814_v37 = vshll.u32 %v3426_v29, %v812_v22  ;;  %v815_v24 = vshrl.u32 %v797_v51, %v813_v42  ;;  %v818_v58 = vadd.s32 127, %v817_v47 }
 0x1b0   : > { %v1245_v46 = vsel %vm3489_vm6, %v4461_v57, %v1242_v23  ;;  %v827_v55 = vsub.s32 4, %v3411_v61  ;;  %v724_v52 = vsel %vm639_vm9, %v723_v59, %v4468_v28  ;;  %v1035_v8 = vsub.s32 4, %v4469_v34  ;;  %v3522_v26 = vpop.eup %2542 }
 0x1b1   : > { %2556 = vsinq.f32 %v1037_v15  ;;  %vm743_vm7 = vcmp.lt.s32.totalorder %v2939_v14, 0  ;;  %v816_v29 = vor.u32 %v815_v24, %v814_v37  ;;  %v819_v17 = vshll.u32 %v818_v58, 23 }
 0x1b2   : > { %v2545_v38 = vpop.eup %2544  ;;  %2558 = vcosq.f32 %v1141_v20  ;;  %v621_v30 = vsel %vm3454_vm12, %v4446_v49, %v618_v48  ;;  %vm3530_vm8 = vcmp.le.f32.partialorder %v741_v54, 0.7853982  ;;  %v1243_v11 = vsub.s32 4, %v3302_v9 }
 0x1b3   : > { %v2547_v12 = vpop.eup %2546  ;;  %2560 = vcosq.f32 %v1245_v46  ;;  %v626_v45 = vadd.s32 3, %v622_v0  ;;  %v820_v18 = vor.u32 4788187, %v819_v17  ;;  %v726_v6 = vsel %vm3481_vm4, 0, %v724_v52 }
 0x1b4   : > { %v3537_v36 = vpop.eup %2548  ;;  %2562 = vsinq.f32 %v1245_v46  ;;  %v828_v32 = vsel %vm743_vm7, %v827_v55, %v3411_v61  ;;  %v523_v54 = vand.u32 3, %v522_v25  ;;  %v1036_v63 = vsel %vm951_vm13, %v1035_v8, %v4469_v34 }
 0x1b5   : > { %2564 = vcosq.f32 %v621_v30  ;;  %v821_v15 = vand.u32 2147483647, %v820_v18  ;;  %v823_v19 = vcvt.s32.f32 %v816_v29  ;;  %v529_v43 = vxor.u32 2147483648, %v2545_v38 }
 0x1b6   : > { %v3545_v53 = vpop.eup %2550  ;;  %2566 = vsinq.f32 %v621_v30  ;;  %v526_v2 = vxor.u32 2147483648, %v2547_v12  ;;  %v730_v41 = vadd.s32 3, %v726_v6  ;;  %v1244_v40 = vsel %vm1159_vm3, %v1243_v11, %v3302_v9  ;;  %v4473_v9 = vld [vmem:[#allocation14_spill] sm:$0xff] }
 0x1b7   : > { %v2553_v31 = vpop.eup %2552  ;;  %v824_v61 = vmul.f32 %v823_v19, %v821_v15  ;;  %v830_v1 = vsel %vm3530_vm8, 0, %v828_v32  ;;  %v1038_v39 = vsel %vm3435_vm15, 0, %v1036_v63  ;;  %v1139_v3 = vsub.s32 4, %v4472_v10 }
 0x1b8   : > { %v2555_v51 = vpop.eup %2554  ;;  %2568 = vsinq.f32 %v1141_v20  ;;  %v3555_v22 = vand.u32 3, %v626_v45  ;;  %vm528_vm9 = vcmp.eq.s32.totalorder %v523_v54, 2  ;;  %v1246_v59 = vsel %vm3489_vm6, 0, %v1244_v40 }
 0x1b9   : > { %v825_v28 = vxor.u32 2147483648, %v824_v61  ;;  %v931_v23 = vsub.s32 4, %v4473_v9  ;;  %v834_v42 = vadd.s32 3, %v830_v1  ;;  %vm525_vm13 = vcmp.eq.s32.totalorder %v523_v54, 0 }
 0x1ba   : > { %v530_v47 = vsel %vm528_vm9, %v529_v43, %v2547_v12  ;;  %v1042_v0 = vadd.s32 3, %v1038_v39  ;;  %v527_v48 = vsel %vm525_vm13, %v2545_v38, %v526_v2  ;;  %v731_v37 = vand.u32 3, %v730_v41 }
 0x1bb   : > { %v2557_v25 = vpop.eup %2556  ;;  %v826_v7 = vsel %vm743_vm7, %v825_v28, %v824_v61  ;;  %v1140_v20 = vsel %vm1055_vm2, %v1139_v3, %v4472_v10  ;;  %v734_v58 = vxor.u32 2147483648, %v2555_v51  ;;  %v737_v46 = vxor.u32 2147483648, %v2553_v31 }
 0x1bc   : > { %v3565_v24 = vpop.eup %2558  ;;  %v829_v27 = vsel %vm3530_vm8, %v2939_v14, %v826_v7  ;;  %v1250_v55 = vadd.s32 3, %v1246_v59  ;;  %vm524_vm14 = vcmp.lt.s32.totalorder %v523_v54, 2  ;;  %vm729_vm15 = vweird.f32 %v4440_v4 }
 0x1bd   : > { %v2561_v52 = vpop.eup %2560  ;;  %2570 = vcosq.f32 %v829_v27  ;;  %v932_v34 = vsel %vm847_vm11, %v931_v23, %v4473_v9  ;;  %vm629_vm0 = vcmp.eq.s32.totalorder %v3555_v22, 0  ;;  %vm632_vm12 = vcmp.eq.s32.totalorder %v3555_v22, 2 }
 0x1be   : > { %v2563_v8 = vpop.eup %2562  ;;  %2572 = vsinq.f32 %v829_v27  ;;  %v3576_v29 = vand.u32 3, %v834_v42  ;;  %v1043_v17 = vand.u32 3, %v1042_v0  ;;  %v1142_v38 = vsel %vm3466_vm1, 0, %v1140_v20 }
 0x1bf   : > { %v2565_v30 = vpop.eup %2564  ;;  %v3580_v5 = vsel %vm524_vm14, %v527_v48, %v530_v47  ;;  %vm732_vm2 = vcmp.lt.s32.totalorder %v731_v37, 2  ;;  %vm733_vm3 = vcmp.eq.s32.totalorder %v731_v37, 0  ;;  %vm736_vm4 = vcmp.eq.s32.totalorder %v731_v37, 2 }
 0x1c0   : > { %v2567_v11 = vpop.eup %2566  ;;  %v735_v12 = vsel %vm733_vm3, %v2553_v31, %v734_v58  ;;  %v738_v45 = vsel %vm736_vm4, %v737_v46, %v2555_v51  ;;  %v1251_v18 = vand.u32 3, %v1250_v55  ;;  %v934_v6 = vsel %vm3419_vm10, 0, %v932_v34 }
 0x1c1   : > { %vm628_vm11 = vcmp.lt.s32.totalorder %v3555_v22, 2  ;;  %v1046_v32 = vxor.u32 2147483648, %v2557_v25  ;;  %v1254_v54 = vxor.u32 2147483648, %v2563_v8  ;;  %v1257_v63 = vxor.u32 2147483648, %v2561_v52 }
 0x1c2   : > { %v1146_v21 = vadd.s32 3, %v1142_v38  ;;  %v2569_v15 = vpop.eup %2568  ;;  %vm1044_vm5 = vcmp.lt.s32.totalorder %v1043_v17, 2  ;;  %v1049_v19 = vxor.u32 2147483648, %v3545_v53  ;;  %vm1249_vm7 = vweird.f32 %v4461_v57 }
 0x1c3   : > { %v630_v43 = vxor.u32 2147483648, %v2567_v11  ;;  %v633_v2 = vxor.u32 2147483648, %v2565_v30  ;;  %vm836_vm10 = vcmp.lt.s32.totalorder %v3576_v29, 2  ;;  %v739_v50 = vsel %vm732_vm2, %v735_v12, %v738_v45  ;;  %v1281_v45 = vpop.permute.xlu1 %1280 }
 0x1c4   : > { %v938_v41 = vadd.s32 3, %v934_v6  ;;  %vm625_vm8 = vweird.f32 %v4446_v49  ;;  %vm833_vm9 = vweird.f32 %v2939_v14  ;;  %vm1041_vm13 = vweird.f32 %v4445_v13 }
 0x1c5   : > { %vm1045_vm14 = vcmp.eq.s32.totalorder %v1043_v17, 0  ;;  %vm1048_vm3 = vcmp.eq.s32.totalorder %v1043_v17, 2  ;;  %vm1253_vm4 = vcmp.eq.s32.totalorder %v1251_v18, 0  ;;  %vm1256_vm1 = vcmp.eq.s32.totalorder %v1251_v18, 2 }
 0x1c6   : > { %vm521_vm6 = vweird.f32 %v4439_v33  ;;  %v1047_v40 = vsel %vm1045_vm14, %v3545_v53, %v1046_v32  ;;  %v1255_v31 = vsel %vm1253_vm4, %v2561_v52, %v1254_v54  ;;  %v1258_v61 = vsel %vm1256_vm1, %v1257_v63, %v2563_v8 }
 0x1c7   : > { %v1147_v1 = vand.u32 3, %v1146_v21  ;;  %v740_v39 = vsel %vm729_vm15, nan, %v739_v50  ;;  %v1050_v10 = vsel %vm1048_vm3, %v1049_v19, %v2557_v25  ;;  %v1150_v3 = vxor.u32 2147483648, %v2569_v15  ;;  %v2571_v28 = vpop.eup %2570 }
 0x1c8   : > { %v1153_v51 = vxor.u32 2147483648, %v3565_v24  ;;  %v631_v59 = vsel %vm629_vm0, %v2565_v30, %v630_v43  ;;  %v634_v9 = vsel %vm632_vm12, %v633_v2, %v2567_v11  ;;  %vm1252_vm2 = vcmp.lt.s32.totalorder %v1251_v18, 2  ;;  %v2573_v53 = vpop.eup %2572  ;;  %v2540_v30 = vld [vmem:[%s4359_s3] sm:$0xff]  }
 0x1c9   : > { %v939_v23 = vand.u32 3, %v938_v41  ;;  %v841_v42 = vxor.u32 2147483648, %v2571_v28  ;;  %v1259_v47 = vsel %vm1252_vm2, %v1255_v31, %v1258_v61  ;;  %v942_v0 = vxor.u32 2147483648, %v3537_v36 }
 0x1ca   : > { %v945_v4 = vxor.u32 2147483648, %v3522_v26  ;;  %v838_v25 = vxor.u32 2147483648, %v2573_v53  ;;  %v1051_v7 = vsel %vm1044_vm5, %v1047_v40, %v1050_v10  ;;  %vm1149_vm15 = vcmp.eq.s32.totalorder %v1147_v1, 0 }
 0x1cb   : > { %vm1152_vm1 = vcmp.eq.s32.totalorder %v1147_v1, 2  ;;  %v635_v48 = vsel %vm628_vm11, %v631_v59, %v634_v9  ;;  %vm4474_vm0 = vcmp.eq.s32.totalorder %v3576_v29, 2  ;;  %v1151_v20 = vsel %vm1149_vm15, %v3565_v24, %v1150_v3 }
 0x1cc   : > { %v842_v37 = vsel %vm4474_vm0, %v841_v42, %v2573_v53  ;;  %v1154_v27 = vsel %vm1152_vm1, %v1153_v51, %v2569_v15  ;;  %vm4475_vm12 = vcmp.eq.s32.totalorder %v3576_v29, 0  ;;  %v1260_v46 = vsel %vm1249_vm7, nan, %v1259_v47 }
 0x1cd   : > { %v839_v58 = vsel %vm4475_vm12, %v2571_v28, %v838_v25  ;;  %vm941_vm14 = vcmp.eq.s32.totalorder %v939_v23, 0  ;;  %vm944_vm3 = vcmp.eq.s32.totalorder %v939_v23, 2  ;;  %vm1148_vm11 = vcmp.lt.s32.totalorder %v1147_v1, 2 }
 0x1ce   : > { %v843_v55 = vsel %vm836_vm10, %v839_v58, %v842_v37  ;;  %v943_v22 = vsel %vm941_vm14, %v3522_v26, %v942_v0  ;;  %v946_v52 = vsel %vm944_vm3, %v945_v4, %v3537_v36  ;;  %v636_v24 = vsel %vm625_vm8, nan, %v635_v48 }
 0x1cf   : > { %v844_v34 = vsel %vm833_vm9, nan, %v843_v55  ;;  %v1052_v57 = vsel %vm1041_vm13, nan, %v1051_v7  ;;  %v1155_v8 = vsel %vm1148_vm11, %v1151_v20, %v1154_v27  ;;  %v532_v29 = vsel %vm521_vm6, nan, %v3580_v5 }
 0x1d0   : > { %v1262_v17 = vpack.c.bf16 %v844_v34, %v636_v24  ;;  %v1264_v38 = vpack.c.bf16 %v1260_v46, %v1052_v57  ;;  %vm940_vm5 = vcmp.lt.s32.totalorder %v939_v23, 2  ;;  %v1261_v26 = vpack.c.bf16 %v740_v39, %v532_v29 }
 0x1d1   : > { %v947_v36 = vsel %vm940_vm5, %v943_v22, %v946_v52  ;;  %vm1145_vm7 = vweird.f32 %v4457_v16  ;;  %vm937_vm10 = vweird.f32 %v4441_v44  ;;  %vm1303_vm6 = vcmask 261120   ;;  %v2541_v16 = vld [vmem:[%s4359_s3 + $0x8] sm:$0xff]   ;;  %v1276_v44 = vpop.permute.xlu0 %1275 }
 0x1d2   : > { %1310 = vmatprep.subr.bf16.mxu1 %v1262_v17  ;;  %v1156_v49 = vsel %vm1145_vm7, nan, %v1155_v8  ;;  %v948_v14 = vsel %vm937_vm10, nan, %v947_v36  ;;  %v4476_v33 = vmov 0   ;;  %v4477_v8 = vmov 920167782  }
 0x1d3   : > { %1311 = vmatpush1.bf16.msra.mxu1 %v1261_v26  ;;  %v1263_v13 = vpack.c.bf16 %v1156_v49, %v948_v14  ;;  %v4478_v14 = vmov 1326507024  }
 0x1d4   : > { %1312 = vmatprep.subr.bf16.mxu1 %v1264_v38 }
 0x1d7   : > { %1313 = vmatpush1.bf16.msra.mxu1 %v1263_v13 }
 0x1da   : > { %2381 = vmatmul.mubr.msk.bf16.vlgmr.msra.gmra.mrb[0].mxu1 %vm1303_vm6, %v2540_v30 }
 0x1db   : > { %1352 = vmatprep.mubr.bf16.mxu1 %v4476_v33 }
 0x1e2   : > { %2382 = vmatmul.mubr.msk.bf16.gmra.mrb[4].mxu1 %vm1303_vm6, %v2541_v16 }
 0x2ad   : > { %v1344_v5 = vpop.f32.mrb[0].mxu1 }
 0x2ae   : > { %v3639_v11 = vadd.f32 %v1344_v5, %v1276_v44  ;;  %v1346_v12 = vpop.f32.mrb[1].mxu1 }
 0x2af   : > { %v3641_v18 = vadd.f32 %v1346_v12, %v1276_v44  ;;  %v1348_v6 = vpop.f32.mrb[2].mxu1 }
 0x2b0   : > { %v1363_v32 = vand.u32 2147483647, %v3639_v11  ;;  %v1366_v54 = vand.u32 2139095040, %v3639_v11  ;;  %v3645_v63 = vadd.f32 %v1348_v6, %v1281_v45  ;;  %v1350_v21 = vpop.f32.mrb[3].mxu1 }
 0x2b1   : > { %v1467_v15 = vand.u32 2147483647, %v3641_v18  ;;  %v1470_v19 = vand.u32 2139095040, %v3641_v18  ;;  %v3656_v51 = vadd.f32 %v1350_v21, %v1281_v45 }
 0x2b2   : > { %v1367_v43 = vshrl.u32 %v1366_v54, 23  ;;  %v1370_v2 = vand.u32 8388607, %v1363_v32  ;;  %v1574_v40 = vand.u32 2139095040, %v3645_v63  ;;  %v1571_v9 = vand.u32 2147483647, %v3645_v63 }
 0x2b3   : > { %v1471_v50 = vshrl.u32 %v1470_v19, 23  ;;  %v1474_v41 = vand.u32 8388607, %v1467_v15  ;;  %v1678_v58 = vand.u32 2139095040, %v3656_v51 }
 0x2b4   : > { %v2383_v31 = vadd.s32 4294967169, %v1367_v43  ;;  %v1575_v1 = vshrl.u32 %v1574_v40, 23  ;;  %v1371_v10 = vor.u32 8388608, %v1370_v2  ;;  %v3671_v20 = vand.u32 8388607, %v1571_v9 }
 0x2b5   : > { %v2387_v61 = vadd.s32 4294967169, %v1471_v50  ;;  %v3654_v39 = vpop.f32.mrb[4].mxu1  ;;  %v1475_v28 = vor.u32 8388608, %v1474_v41 }
 0x2b6   : > { %v1373_v3 = vadd.s32 1, %v2383_v31  ;;  %v2391_v23 = vadd.s32 4294967169, %v1575_v1  ;;  %v3659_v53 = vpop.f32.mrb[5].mxu1  ;;  %v3665_v7 = vshll.u32 %v1371_v10, 8 }
 0x2b7   : > { %v1477_v59 = vadd.s32 1, %v2387_v61  ;;  %v3661_v42 = vpop.f32.mrb[6].mxu1  ;;  %v3667_v37 = vshll.u32 %v1475_v28, 8 }
 0x2b8   : > { %vm1374_vm8 = vcmp.gt.s32.totalorder %v1373_v3, 0  ;;  %v3663_v0 = vpop.f32.mrb[7].mxu1  ;;  %v3673_v27 = vadd.s32 1, %v2391_v23 }
 0x2b9   : > { %v1375_v47 = vsel %vm1374_vm8, %v1373_v3, 0  ;;  %vm1478_vm9 = vcmp.gt.s32.totalorder %v1477_v59, 0 }
 0x2ba   : > { %v1376_v4 = vshrl.u32 %v1375_v47, 5  ;;  %v1377_v25 = vand.u32 31, %v1375_v47  ;;  %v1479_v48 = vsel %vm1478_vm9, %v1477_v59, 0  ;;  %vm1582_vm1 = vcmp.gt.s32.totalorder %v3673_v27, 0 }
 0x2bb   : > { %v3677_v22 = vshrl.u32 %v1479_v48, 5  ;;  %v1481_v52 = vand.u32 31, %v1479_v48 }
 0x2bc   : > { %v1378_v46 = vsub.s32 32, %v1377_v25  ;;  %v1380_v55 = vshll.u32 %v4427_v62, %v1377_v25  ;;  %v1383_v24 = vshll.u32 %v4434_v56, %v1377_v25  ;;  %v1386_v34 = vshll.u32 %v4435_v35, %v1377_v25 }
 0x2bd   : > { %v1389_v57 = vshll.u32 %v4430_v60, %v1377_v25  ;;  %v1392_v17 = vshll.u32 %v4477_v8, %v1377_v25  ;;  %vm1395_vm13 = vcmp.lt.s32.totalorder %v1376_v4, 1  ;;  %vm1396_vm4 = vcmp.lt.s32.totalorder %v1376_v4, 2 }
 0x2be   : > { %v1381_v29 = vshrl.u32 %v4434_v56, %v1378_v46  ;;  %v1384_v38 = vshrl.u32 %v4435_v35, %v1378_v46  ;;  %v1387_v26 = vshrl.u32 %v4430_v60, %v1378_v46  ;;  %v1379_v36 = vshrl.u32 %v4427_v62, %v1378_v46 }
 0x2bf   : > { %v1390_v49 = vshrl.u32 %v4477_v8, %v1378_v46  ;;  %v1393_v13 = vshrl.u32 %v4478_v14, %v1378_v46  ;;  %v1482_v44 = vsub.s32 32, %v1481_v52  ;;  %vm1397_vm2 = vcmp.lt.s32.totalorder %v1376_v4, 3 }
 0x2c0   : > { %v1382_v30 = vor.u32 %v1381_v29, %v1380_v55  ;;  %v1385_v33 = vor.u32 %v1384_v38, %v1383_v24  ;;  %v1388_v16 = vor.u32 %v1387_v26, %v1386_v34  ;;  %vm1398_vm15 = vcmp.lt.s32.totalorder %v1376_v4, 4 }
 0x2c1   : > { %v1391_v5 = vor.u32 %v1390_v49, %v1389_v57  ;;  %v1394_v12 = vor.u32 %v1393_v13, %v1392_v17  ;;  %v1484_v50 = vshll.u32 %v4427_v62, %v1481_v52  ;;  %v1485_v31 = vshrl.u32 %v4434_v56, %v1482_v44 }
 0x2c2   : > { %v1399_v45 = vsel %vm1395_vm13, %v1379_v36, %v1382_v30  ;;  %v1400_v6 = vsel %vm1398_vm15, %v1388_v16, 2102212464  ;;  %v1403_v54 = vsel %vm1395_vm13, %v1382_v30, %v1385_v33  ;;  %v1407_v21 = vsel %vm1395_vm13, %v1385_v33, %v1388_v16 }
 0x2c3   : > { %v1401_v19 = vsel %vm1397_vm2, %v1385_v33, %v1400_v6  ;;  %v1404_v43 = vsel %vm1398_vm15, %v1391_v5, 920167782  ;;  %v1408_v2 = vsel %vm1398_vm15, %v1394_v12, 1326507024  ;;  %v1487_v61 = vshll.u32 %v4434_v56, %v1481_v52 }
 0x2c4   : > { %v1405_v41 = vsel %vm1397_vm2, %v1388_v16, %v1404_v43  ;;  %v1409_v40 = vsel %vm1397_vm2, %v1391_v5, %v1408_v2  ;;  %v1402_v1 = vsel %vm1396_vm4, %v1399_v45, %v1401_v19  ;;  %v1488_v28 = vshrl.u32 %v4435_v35, %v1482_v44 }
 0x2c5   : > { %v1406_v10 = vsel %vm1396_vm4, %v1403_v54, %v1405_v41  ;;  %v1410_v3 = vsel %vm1396_vm4, %v1407_v21, %v1409_v40  ;;  %v1486_v48 = vor.u32 %v1485_v31, %v1484_v50  ;;  %v1490_v55 = vshll.u32 %v4435_v35, %v1481_v52 }
 0x2c6   : > { %v3701_v59 = vmul.u32.u64.low %v3665_v7, %v1410_v3  ;;  %v3702_v23 = vmul.u32.u64.high %v3665_v7, %v1410_v3, %v3701_v59  ;;  %v3705_v47 = vmul.u32.u64.low %v3665_v7, %v1406_v10  ;;  %v3706_v25 = vmul.u32.u64.high %v3665_v7, %v1406_v10, %v3705_v47 }
 0x2c7   : > { %v1489_v46 = vor.u32 %v1488_v28, %v1487_v61  ;;  %v1491_v24 = vshrl.u32 %v4430_v60, %v1482_v44  ;;  %v1483_v4 = vshrl.u32 %v4427_v62, %v1482_v44  ;;  %v1493_v34 = vshll.u32 %v4430_v60, %v1481_v52 }
 0x2c8   : > { %v1494_v57 = vshrl.u32 %v4477_v8, %v1482_v44  ;;  %v1497_v17 = vshrl.u32 %v4478_v14, %v1482_v44  ;;  %v1418_v29 = vmul.u32 %v3665_v7, %v1402_v1  ;;  %v1496_v26 = vshll.u32 %v4477_v8, %v1481_v52 }
 0x2c9   : > { %v1492_v38 = vor.u32 %v1491_v24, %v1490_v55  ;;  %vm1499_vm0 = vcmp.lt.s32.totalorder %v3677_v22, 1  ;;  %vm1420_vm12 = vc.u32 %v3702_v23, %v3705_v47  ;;  %v1421_v36 = vadd.s32 1, %v3706_v25 }
 0x2ca   : > { %v1495_v49 = vor.u32 %v1494_v57, %v1493_v34  ;;  %vm1500_vm14 = vcmp.lt.s32.totalorder %v3677_v22, 2  ;;  %v1498_v13 = vor.u32 %v1497_v17, %v1496_v26  ;;  %vm1501_vm3 = vcmp.lt.s32.totalorder %v3677_v22, 3 }
 0x2cb   : > { %vm1502_vm11 = vcmp.lt.s32.totalorder %v3677_v22, 4  ;;  %v1507_v30 = vsel %vm1499_vm0, %v1486_v48, %v1489_v46  ;;  %v1422_v7 = vsel %vm1420_vm12, %v1421_v36, %v3706_v25  ;;  %v1511_v16 = vsel %vm1499_vm0, %v1489_v46, %v1492_v38 }
 0x2cc   : > { %v1504_v33 = vsel %vm1502_vm11, %v1492_v38, 2102212464  ;;  %v1508_v52 = vsel %vm1502_vm11, %v1495_v49, 920167782  ;;  %v1423_v44 = vadd.s32 %v1422_v7, %v1418_v29  ;;  %v1503_v5 = vsel %vm1499_vm0, %v1483_v4, %v1486_v48 }
 0x2cd   : > { %v1509_v12 = vsel %vm1501_vm3, %v1492_v38, %v1508_v52  ;;  %v1512_v45 = vsel %vm1502_vm11, %v1498_v13, 1326507024  ;;  %v1505_v6 = vsel %vm1501_vm3, %v1489_v46, %v1504_v33  ;;  %v1583_v19 = vsel %vm1582_vm1, %v3673_v27, 0 }
 0x2ce   : > { %v1510_v54 = vsel %vm1500_vm14, %v1507_v30, %v1509_v12  ;;  %v1513_v21 = vsel %vm1501_vm3, %v1495_v49, %v1512_v45  ;;  %v1424_v43 = vadd.s32 536870912, %v1423_v44  ;;  %v1506_v1 = vsel %vm1500_vm14, %v1503_v5, %v1505_v6 }
 0x2cf   : > { %v1514_v2 = vsel %vm1500_vm14, %v1511_v16, %v1513_v21  ;;  %v3733_v50 = vmul.u32.u64.low %v3667_v37, %v1510_v54  ;;  %v3734_v41 = vmul.u32.u64.high %v3667_v37, %v1510_v54, %v3733_v50  ;;  %v1579_v27 = vor.u32 8388608, %v3671_v20 }
 0x2d0   : > { %v3738_v40 = vmul.u32.u64.low %v3667_v37, %v1514_v2  ;;  %v3739_v31 = vmul.u32.u64.high %v3667_v37, %v1514_v2, %v3738_v40  ;;  %v3741_v61 = vshrl.u32 %v1424_v43, 30  ;;  %v1585_v10 = vand.u32 31, %v1583_v19 }
 0x2d1   : > { %v1525_v28 = vadd.s32 1, %v3734_v41  ;;  %v1679_v25 = vshrl.u32 %v1678_v58, 23  ;;  %v1522_v48 = vmul.u32 %v3667_v37, %v1506_v1  ;;  %v1584_v46 = vshrl.u32 %v1583_v19, 5 }
 0x2d2   : > { %v1426_v3 = vshll.u32 %v3741_v61, 30  ;;  %v1586_v59 = vsub.s32 32, %v1585_v10  ;;  %vm1524_vm5 = vc.u32 %v3739_v31, %v3733_v50  ;;  %v1588_v20 = vshll.u32 %v4427_v62, %v1585_v10 }
 0x2d3   : > { %v1526_v22 = vsel %vm1524_vm5, %v1525_v28, %v3734_v41  ;;  %v3757_v24 = vshll.u32 %v1579_v27, 8  ;;  %v1591_v57 = vshll.u32 %v4434_v56, %v1585_v10  ;;  %v1594_v17 = vshll.u32 %v4435_v35, %v1585_v10 }
 0x2d4   : > { %v3753_v55 = vsub.s32 %v1423_v44, %v1426_v3  ;;  %v1527_v4 = vadd.s32 %v1526_v22, %v1522_v48  ;;  %v1589_v34 = vshrl.u32 %v4434_v56, %v1586_v59  ;;  %v1592_v58 = vshrl.u32 %v4435_v35, %v1586_v59 }
 0x2d5   : > { %v1595_v29 = vshrl.u32 %v4430_v60, %v1586_v59  ;;  %v2395_v38 = vadd.s32 4294967169, %v1679_v25  ;;  %vm1603_vm7 = vcmp.lt.s32.totalorder %v1584_v46, 1  ;;  %v1597_v7 = vshll.u32 %v4430_v60, %v1585_v10 }
 0x2d6   : > { %v1429_v37 = vsub.s32 0, %v3753_v55  ;;  %v1528_v26 = vadd.s32 536870912, %v1527_v4  ;;  %v1590_v36 = vor.u32 %v1589_v34, %v1588_v20  ;;  %v1593_v49 = vor.u32 %v1592_v58, %v1591_v57 }
 0x2d7   : > { %v1596_v30 = vor.u32 %v1595_v29, %v1594_v17  ;;  %v1598_v33 = vshrl.u32 %v4477_v8, %v1586_v59  ;;  %v1600_v16 = vshll.u32 %v4477_v8, %v1585_v10  ;;  %v1601_v44 = vshrl.u32 %v4478_v14, %v1586_v59 }
 0x2d8   : > { %v2384_v13 = vmin.u32 %v1429_v37, %v3753_v55  ;;  %v3768_v52 = vshrl.u32 %v1528_v26, 30  ;;  %vm1604_vm10 = vcmp.lt.s32.totalorder %v1584_v46, 2  ;;  %vm1605_vm8 = vcmp.lt.s32.totalorder %v1584_v46, 3 }
 0x2d9   : > { %v1599_v12 = vor.u32 %v1598_v33, %v1597_v7  ;;  %vm1606_vm9 = vcmp.lt.s32.totalorder %v1584_v46, 4  ;;  %v1602_v6 = vor.u32 %v1601_v44, %v1600_v16  ;;  %v1611_v54 = vsel %vm1603_vm7, %v1590_v36, %v1593_v49  ;;  %v3801_v44 = vpop.permute.xlu0 %1285 }
 0x2da   : > { %v1431_v5 = vclz %v2384_v13  ;;  %v1530_v45 = vshll.u32 %v3768_v52, 30  ;;  %v1685_v21 = vadd.s32 1, %v2395_v38  ;;  %v1587_v43 = vshrl.u32 %v4427_v62, %v1586_v59 }
 0x2db   : > { %v1612_v2 = vsel %vm1606_vm9, %v1599_v12, 920167782  ;;  %v1615_v41 = vsel %vm1603_vm7, %v1593_v49, %v1596_v30  ;;  %v1608_v1 = vsel %vm1606_vm9, %v1596_v30, 2102212464  ;;  %v1616_v10 = vsel %vm1606_vm9, %v1602_v6, 1326507024 }
 0x2dc   : > { %v2385_v19 = vadd.s32 4294967294, %v1431_v5  ;;  %v3776_v40 = vsub.s32 %v1527_v4, %v1530_v45  ;;  %v1613_v27 = vsel %vm1605_vm8, %v1596_v30, %v1612_v2  ;;  %v1617_v28 = vsel %vm1605_vm8, %v1599_v12, %v1616_v10 }
 0x2dd   : > { %v1614_v3 = vsel %vm1604_vm10, %v1611_v54, %v1613_v27  ;;  %vm1686_vm4 = vcmp.gt.s32.totalorder %v1685_v21, 0  ;;  %v1618_v59 = vsel %vm1604_vm10, %v1615_v41, %v1617_v28  ;;  %v1607_v4 = vsel %vm1603_vm7, %v1587_v43, %v1590_v36 }
 0x2de   : > { %vm2386_vm13 = vcmp.lt.s32.totalorder %v2385_v19, 0  ;;  %v1533_v48 = vsub.s32 0, %v3776_v40  ;;  %v1687_v22 = vsel %vm1686_vm4, %v1685_v21, 0  ;;  %v1609_v34 = vsel %vm1605_vm8, %v1593_v49, %v1608_v1 }
 0x2df   : > { %v1434_v25 = vsel %vm2386_vm13, 0, %v2385_v19  ;;  %v1675_v57 = vand.u32 2147483647, %v3656_v51  ;;  %v3788_v37 = vmul.u32.u64.low %v3757_v24, %v1618_v59  ;;  %v3789_v17 = vmul.u32.u64.high %v3757_v24, %v1618_v59, %v3788_v37 }
 0x2e0   : > { %v1439_v20 = vsub.s32 4294967266, %v1434_v25  ;;  %v2388_v58 = vmin.u32 %v1533_v48, %v3776_v40  ;;  %v1689_v29 = vand.u32 31, %v1687_v22  ;;  %v1610_v36 = vsel %vm1604_vm10, %v1607_v4, %v1609_v34 }
 0x2e1   : > { %v3792_v38 = vmul.u32.u64.low %v3757_v24, %v1614_v3  ;;  %v3793_v26 = vmul.u32.u64.high %v3757_v24, %v1614_v3, %v3792_v38  ;;  %v1682_v49 = vand.u32 8388607, %v1675_v57  ;;  %v1435_v7 = vsub.s32 32, %v1434_v25 }
 0x2e2   : > { %v1535_v13 = vclz %v2388_v58  ;;  %v1440_v30 = vadd.s32 127, %v1439_v20  ;;  %v1690_v16 = vsub.s32 32, %v1689_v29  ;;  %v1419_v12 = vadd.s32 %v3705_v47, %v3702_v23 }
 0x2e3   : > { %vm1628_vm2 = vc.u32 %v3789_v17, %v3792_v38  ;;  %v1629_v5 = vadd.s32 1, %v3793_v26  ;;  %v1626_v46 = vmul.u32 %v3757_v24, %v1610_v36  ;;  %v3809_v45 = vadd.f32 %v3654_v39, %v3801_v44 }
 0x2e4   : > { %v2389_v33 = vadd.s32 4294967294, %v1535_v13  ;;  %v1441_v6 = vshll.u32 %v1440_v30, 23  ;;  %v1683_v19 = vor.u32 8388608, %v1682_v49  ;;  %v1437_v43 = vshrl.u32 %v1419_v12, %v1435_v7 }
 0x2e5   : > { %v1630_v21 = vsel %vm1628_vm2, %v1629_v5, %v3793_v26  ;;  %v1693_v41 = vshrl.u32 %v4434_v56, %v1690_v16  ;;  %v1696_v1 = vshrl.u32 %v4435_v35, %v1690_v16  ;;  %v1436_v23 = vshll.u32 %v3753_v55, %v1434_v25 }
 0x2e6   : > { %vm2390_vm15 = vcmp.lt.s32.totalorder %v2389_v33, 0  ;;  %v1631_v2 = vadd.s32 %v1630_v21, %v1626_v46  ;;  %v1699_v24 = vshrl.u32 %v4430_v60, %v1690_v16  ;;  %v1702_v39 = vshrl.u32 %v4477_v8, %v1690_v16 }
 0x2e7   : > { %v3811_v54 = vsel %vm2390_vm15, 0, %v2389_v33  ;;  %v1688_v10 = vshrl.u32 %v1687_v22, 5  ;;  %v1692_v3 = vshll.u32 %v4427_v62, %v1689_v29  ;;  %v1695_v28 = vshll.u32 %v4434_v56, %v1689_v29 }
 0x2e8   : > { %v1543_v47 = vsub.s32 4294967266, %v3811_v54  ;;  %v1632_v27 = vadd.s32 536870912, %v1631_v2  ;;  %v1442_v48 = vor.u32 4788187, %v1441_v6  ;;  %v1698_v59 = vshll.u32 %v4435_v35, %v1689_v29 }
 0x2e9   : > { %v1701_v20 = vshll.u32 %v4430_v60, %v1689_v29  ;;  %v1705_v4 = vshrl.u32 %v4478_v14, %v1690_v16  ;;  %v1438_v55 = vor.u32 %v1437_v43, %v1436_v23  ;;  %v1694_v34 = vor.u32 %v1693_v41, %v1692_v3 }
 0x2ea   : > { %v3825_v25 = vshrl.u32 %v1632_v27, 30  ;;  %v1697_v58 = vor.u32 %v1696_v1, %v1695_v28  ;;  %v1544_v37 = vadd.s32 127, %v1543_v47  ;;  %v1700_v26 = vor.u32 %v1699_v24, %v1698_v59 }
 0x2eb   : > { %v1703_v13 = vor.u32 %v1702_v39, %v1701_v20  ;;  %v1704_v22 = vshll.u32 %v4477_v8, %v1689_v29  ;;  %v1523_v30 = vadd.s32 %v3733_v50, %v3739_v31  ;;  %v1691_v49 = vshrl.u32 %v4427_v62, %v1690_v16 }
 0x2ec   : > { %v1634_v36 = vshll.u32 %v3825_v25, 30  ;;  %v1723_v7 = vshll.u32 %v1683_v19, 8  ;;  %v1443_v33 = vand.u32 2147483647, %v1442_v48  ;;  %v1539_v5 = vsub.s32 32, %v3811_v54 }
 0x2ed   : > { %v1706_v12 = vor.u32 %v1705_v4, %v1704_v22  ;;  %vm1707_vm1 = vcmp.lt.s32.totalorder %v1688_v10, 1  ;;  %v1445_v46 = vcvt.s32.f32 %v1438_v55  ;;  %vm1710_vm0 = vcmp.lt.s32.totalorder %v1688_v10, 4 }
 0x2ee   : > { %v3833_v6 = vsub.s32 %v1631_v2, %v1634_v36  ;;  %v1715_v21 = vsel %vm1707_vm1, %v1694_v34, %v1697_v58  ;;  %v1545_v29 = vshll.u32 %v1544_v37, 23  ;;  %vm1709_vm12 = vcmp.lt.s32.totalorder %v1688_v10, 3 }
 0x2ef   : > { %v1712_v43 = vsel %vm1710_vm0, %v1700_v26, 2102212464  ;;  %v1716_v50 = vsel %vm1710_vm0, %v1703_v13, 920167782  ;;  %vm1708_vm14 = vcmp.lt.s32.totalorder %v1688_v10, 2  ;;  %v1719_v19 = vsel %vm1707_vm1, %v1697_v58, %v1700_v26 }
 0x2f0   : > { %v1637_v31 = vsub.s32 0, %v3833_v6  ;;  %v1717_v16 = vsel %vm1709_vm12, %v1700_v26, %v1716_v50  ;;  %v1446_v41 = vmul.f32 %v1445_v46, %v1443_v33  ;;  %v1541_v1 = vshrl.u32 %v1523_v30, %v1539_v5 }
 0x2f1   : > { %v1718_v23 = vsel %vm1708_vm14, %v1715_v21, %v1717_v16  ;;  %v1720_v47 = vsel %vm1710_vm0, %v1706_v12, 1326507024  ;;  %v1711_v24 = vsel %vm1707_vm1, %v1691_v49, %v1694_v34  ;;  %v1713_v39 = vsel %vm1709_vm12, %v1697_v58, %v1712_v43 }
 0x2f2   : > { %v2392_v2 = vmin.u32 %v1637_v31, %v3833_v6  ;;  %v1721_v27 = vsel %vm1709_vm12, %v1703_v13, %v1720_v47  ;;  %v1546_v3 = vor.u32 4788187, %v1545_v29  ;;  %v1540_v20 = vshll.u32 %v3776_v40, %v3811_v54 }
 0x2f3   : > { %v1722_v28 = vsel %vm1708_vm14, %v1719_v19, %v1721_v27  ;;  %v3842_v48 = vmul.u32.u64.low %v1723_v7, %v1718_v23  ;;  %v3843_v59 = vmul.u32.u64.high %v1723_v7, %v1718_v23, %v3842_v48  ;;  %v1714_v26 = vsel %vm1708_vm14, %v1711_v24, %v1713_v39 }
 0x2f4   : > { %v1639_v4 = vclz %v2392_v2  ;;  %v3848_v55 = vmul.u32.u64.low %v1723_v7, %v1722_v28  ;;  %v3849_v37 = vmul.u32.u64.high %v1723_v7, %v1722_v28, %v3848_v55  ;;  %v1782_v34 = vand.u32 2139095040, %v3809_v45 }
 0x2f5   : > { %v1542_v58 = vor.u32 %v1541_v1, %v1540_v20  ;;  %v1447_v22 = vxor.u32 2147483648, %v1446_v41  ;;  %v1547_v30 = vand.u32 2147483647, %v1546_v3  ;;  %v1733_v36 = vadd.s32 1, %v3843_v59 }
 0x2f6   : > { %v2393_v13 = vadd.s32 4294967294, %v1639_v4  ;;  %v1783_v49 = vshrl.u32 %v1782_v34, 23  ;;  %v1730_v33 = vmul.u32 %v1723_v7, %v1714_v26  ;;  %vm1732_vm11 = vc.u32 %v3849_v37, %v3842_v48 }
 0x2f7   : > { %v4413_v40 = vand.u32 2147483647, %v3809_v45  ;;  %v1734_v54 = vsel %vm1732_vm11, %v1733_v36, %v3843_v59  ;;  %v3860_v5 = vadd.f32 %v3659_v53, %v3801_v44  ;;  %v1549_v12 = vcvt.s32.f32 %v1542_v58 }
 0x2f8   : > { %vm2394_vm3 = vcmp.lt.s32.totalorder %v2393_v13, 0  ;;  %v2399_v10 = vadd.s32 4294967169, %v1783_v49  ;;  %v1735_v21 = vadd.s32 %v1734_v54, %v1730_v33  ;;  %vm1365_vm5 = vcmp.lt.s32.totalorder %v3639_v11, 0 }
 0x2f9   : > { %v3862_v46 = vsel %vm2394_vm3, 0, %v2393_v13  ;;  %v1448_v7 = vsel %vm1365_vm5, %v1447_v22, %v1446_v41  ;;  %v3867_v43 = vmul.f32 %v1549_v12, %v1547_v30  ;;  %v1786_v31 = vand.u32 8388607, %v4413_v40 }
 0x2fa   : > { %v1789_v29 = vadd.s32 1, %v2399_v10  ;;  %v1736_v50 = vadd.s32 536870912, %v1735_v21  ;;  %v1647_v16 = vsub.s32 4294967266, %v3862_v46  ;;  %v1886_v53 = vand.u32 2139095040, %v3860_v5 }
 0x2fb   : > { %vm3875_vm10 = vcmp.le.f32.partialorder %v1363_v32, 0.7853982  ;;  %v1449_v1 = vsub.s32 4, %v3741_v61  ;;  %v1627_v47 = vadd.s32 %v3792_v38, %v3789_v17  ;;  %v1551_v24 = vxor.u32 2147483648, %v3867_v43 }
 0x2fc   : > { %vm1790_vm7 = vcmp.gt.s32.totalorder %v1789_v29, 0  ;;  %v3879_v19 = vshrl.u32 %v1736_v50, 30  ;;  %v3885_v23 = vsel %vm3875_vm10, %v3639_v11, %v1448_v7  ;;  %v1787_v39 = vor.u32 8388608, %v1786_v31 }
 0x2fd   : > { %v1791_v41 = vsel %vm1790_vm7, %v1789_v29, 0  ;;  %v4412_v27 = vand.u32 2147483647, %v3860_v5  ;;  %v1643_v3 = vsub.s32 32, %v3862_v46  ;;  %v1648_v28 = vadd.s32 127, %v1647_v16 }
 0x2fe   : > { %v1793_v2 = vand.u32 31, %v1791_v41  ;;  %v1738_v32 = vshll.u32 %v3879_v19, 30  ;;  %v1887_v20 = vshrl.u32 %v1886_v53, 23  ;;  %v1792_v55 = vshrl.u32 %v1791_v41, 5 }
 0x2ff   : > { %vm1469_vm8 = vcmp.lt.s32.totalorder %v3641_v18, 0  ;;  %v3907_v12 = vshll.u32 %v1787_v39, 8  ;;  %v1645_v31 = vshrl.u32 %v1627_v47, %v1643_v3  ;;  %v1649_v16 = vshll.u32 %v1648_v28, 23 }
 0x300   : > { %v1794_v59 = vsub.s32 32, %v1793_v2  ;;  %v3893_v4 = vsub.s32 %v1735_v21, %v1738_v32  ;;  %v1796_v26 = vshll.u32 %v4427_v62, %v1793_v2  ;;  %v1799_v17 = vshll.u32 %v4434_v56, %v1793_v2 }
 0x301   : > { %v1802_v58 = vshll.u32 %v4435_v35, %v1793_v2  ;;  %v1805_v30 = vshll.u32 %v4430_v60, %v1793_v2  ;;  %v1808_v10 = vshll.u32 %v4477_v8, %v1793_v2  ;;  %v1644_v21 = vshll.u32 %v3833_v6, %v3862_v46 }
 0x302   : > { %v1797_v38 = vshrl.u32 %v4434_v56, %v1794_v59  ;;  %v1800_v34 = vshrl.u32 %v4435_v35, %v1794_v59  ;;  %v1803_v13 = vshrl.u32 %v4430_v60, %v1794_v59  ;;  %v1741_v22 = vsub.s32 0, %v3893_v4 }
 0x303   : > { %v1806_v36 = vshrl.u32 %v4477_v8, %v1794_v59  ;;  %v1809_v49 = vshrl.u32 %v4478_v14, %v1794_v59  ;;  %vm1811_vm9 = vcmp.lt.s32.totalorder %v1792_v55, 1  ;;  %vm1814_vm13 = vcmp.lt.s32.totalorder %v1792_v55, 4 }
 0x304   : > { %v1798_v33 = vor.u32 %v1797_v38, %v1796_v26  ;;  %v1801_v54 = vor.u32 %v1800_v34, %v1799_v17  ;;  %v2396_v29 = vmin.u32 %v1741_v22, %v3893_v4  ;;  %v1804_v7 = vor.u32 %v1803_v13, %v1802_v58 }
 0x305   : > { %v1807_v50 = vor.u32 %v1806_v36, %v1805_v30  ;;  %v1810_v53 = vor.u32 %v1809_v49, %v1808_v10  ;;  %v2403_v26 = vadd.s32 4294967169, %v1887_v20  ;;  %vm3914_vm4 = vcmp.le.f32.partialorder %v1467_v15, 0.7853982 }
 0x306   : > { %v1743_v41 = vclz %v2396_v29  ;;  %v1819_v32 = vsel %vm1811_vm9, %v1798_v33, %v1801_v54  ;;  %v1795_v6 = vshrl.u32 %v4427_v62, %v1794_v59  ;;  %vm1812_vm2 = vcmp.lt.s32.totalorder %v1792_v55, 2  ;;  %v3925_v59 = vpop.permute.xlu1 %1290 }
 0x307   : > { %vm1813_vm15 = vcmp.lt.s32.totalorder %v1792_v55, 3  ;;  %v1820_v46 = vsel %vm1814_vm13, %v1807_v50, 920167782  ;;  %v1816_v47 = vsel %vm1814_vm13, %v1804_v7, 2102212464  ;;  %v1823_v28 = vsel %vm1811_vm9, %v1801_v54, %v1804_v7 }
 0x308   : > { %v2397_v39 = vadd.s32 4294967294, %v1743_v41  ;;  %v1821_v3 = vsel %vm1813_vm15, %v1804_v7, %v1820_v46  ;;  %v1650_v17 = vor.u32 4788187, %v1649_v16  ;;  %v1815_v38 = vsel %vm1811_vm9, %v1795_v6, %v1798_v33 }
 0x309   : > { %v1822_v34 = vsel %vm1812_vm2, %v1819_v32, %v1821_v3  ;;  %v1824_v20 = vsel %vm1814_vm13, %v1810_v53, 1326507024  ;;  %v1817_v30 = vsel %vm1813_vm15, %v1801_v54, %v1816_v47  ;;  %v1893_v49 = vadd.s32 1, %v2403_v26 }
 0x30a   : > { %vm2398_vm1 = vcmp.lt.s32.totalorder %v2397_v39, 0  ;;  %v1825_v58 = vsel %vm1813_vm15, %v1807_v50, %v1824_v20  ;;  %v3921_v15 = vmul.u32.u64.low %v3907_v12, %v1822_v34  ;;  %v3922_v13 = vmul.u32.u64.high %v3907_v12, %v1822_v34, %v3921_v15 }
 0x30b   : > { %v1746_v22 = vsel %vm2398_vm1, 0, %v2397_v39  ;;  %v1826_v36 = vsel %vm1812_vm2, %v1823_v28, %v1825_v58  ;;  %v1552_v33 = vsel %vm1469_vm8, %v1551_v24, %v3867_v43  ;;  %v1646_v10 = vor.u32 %v1645_v31, %v1644_v21 }
 0x30c   : > { %v1751_v29 = vsub.s32 4294967266, %v1746_v22  ;;  %v3933_v7 = vadd.f32 %v3661_v42, %v3925_v59  ;;  %v3936_v50 = vmul.u32.u64.low %v3907_v12, %v1826_v36  ;;  %v3937_v16 = vmul.u32.u64.high %v3907_v12, %v1826_v36, %v3936_v50 }
 0x30d   : > { %v1890_v54 = vand.u32 8388607, %v4412_v27  ;;  %vm1894_vm0 = vcmp.gt.s32.totalorder %v1893_v49, 0  ;;  %v1651_v53 = vand.u32 2147483647, %v1650_v17  ;;  %v1818_v41 = vsel %vm1812_vm2, %v1815_v38, %v1817_v30 }
 0x30e   : > { %v1837_v32 = vadd.s32 1, %v3922_v13  ;;  %v1895_v43 = vsel %vm1894_vm0, %v1893_v49, 0  ;;  %v3948_v42 = vsel %vm1365_vm5, %v1449_v1, %v3741_v61  ;;  %2574 = vcosq.f32 %v3885_v23 }
 0x30f   : > { %v1747_v24 = vsub.s32 32, %v1746_v22  ;;  %v1897_v21 = vand.u32 31, %v1895_v43  ;;  %v3954_v31 = vsel %vm3914_vm4, %v3641_v18, %v1552_v33  ;;  %v1653_v55 = vcvt.s32.f32 %v1646_v10 }
 0x310   : > { %v1731_v26 = vadd.s32 %v3842_v48, %v3849_v37  ;;  %v1752_v6 = vadd.s32 127, %v1751_v29  ;;  %v1834_v46 = vmul.u32 %v3907_v12, %v1818_v41  ;;  %vm1836_vm12 = vc.u32 %v3937_v16, %v3921_v15 }
 0x311   : > { %v1898_v61 = vsub.s32 32, %v1897_v21  ;;  %v4411_v1 = vand.u32 2147483647, %v3933_v7  ;;  %v1654_v39 = vmul.f32 %v1653_v55, %v1651_v53  ;;  %v1838_v47 = vsel %vm1836_vm12, %v1837_v32, %v3922_v13 }
 0x312   : > { %v1891_v3 = vor.u32 8388608, %v1890_v54  ;;  %v1990_v28 = vand.u32 2139095040, %v3933_v7  ;;  %v1749_v17 = vshrl.u32 %v1731_v26, %v1747_v24  ;;  %v1839_v38 = vadd.s32 %v1838_v47, %v1834_v46 }
 0x313   : > { %v1901_v34 = vshrl.u32 %v4434_v56, %v1898_v61  ;;  %v1904_v48 = vshrl.u32 %v4435_v35, %v1898_v61  ;;  %v1753_v37 = vshll.u32 %v1752_v6, 23  ;;  %v1900_v12 = vshll.u32 %v4427_v62, %v1897_v21 }
 0x314   : > { %v1903_v20 = vshll.u32 %v4434_v56, %v1897_v21  ;;  %v1907_v58 = vshrl.u32 %v4430_v60, %v1898_v61  ;;  %v1840_v30 = vadd.s32 536870912, %v1839_v38  ;;  %v1896_v36 = vshrl.u32 %v1895_v43, 5 }
 0x315   : > { %v1909_v13 = vshll.u32 %v4430_v60, %v1897_v21  ;;  %v1910_v49 = vshrl.u32 %v4477_v8, %v1898_v61  ;;  %v1902_v33 = vor.u32 %v1901_v34, %v1900_v12  ;;  %v1906_v29 = vshll.u32 %v4435_v35, %v1897_v21 }
 0x316   : > { %v1905_v10 = vor.u32 %v1904_v48, %v1903_v20  ;;  %v1913_v50 = vshrl.u32 %v4478_v14, %v1898_v61  ;;  %vm1573_vm14 = vcmp.lt.s32.totalorder %v3645_v63, 0  ;;  %v1655_v54 = vxor.u32 2147483648, %v1654_v39 }
 0x317   : > { %v1748_v53 = vshll.u32 %v3893_v4, %v1746_v22  ;;  %v3975_v41 = vshrl.u32 %v1840_v30, 30  ;;  %v1911_v32 = vor.u32 %v1910_v49, %v1909_v13  ;;  %v1754_v24 = vor.u32 4788187, %v1753_v37 }
 0x318   : > { %v1908_v43 = vor.u32 %v1907_v58, %v1906_v29  ;;  %v1912_v55 = vshll.u32 %v4477_v8, %v1897_v21  ;;  %v3978_v26 = vshll.u32 %v1891_v3, 8  ;;  %v3980_v6 = vpop.eup %2574  ;;  %vm1915_vm3 = vcmp.lt.s32.totalorder %v1896_v36, 1 }
 0x319   : > { %v1750_v46 = vor.u32 %v1749_v17, %v1748_v53  ;;  %v1842_v47 = vshll.u32 %v3975_v41, 30  ;;  %vm1918_vm11 = vcmp.lt.s32.totalorder %v1896_v36, 4  ;;  %vm3985_vm5 = vcmp.le.f32.partialorder %v1571_v9, 0.7853982 }
 0x31a   : > { %v1914_v22 = vor.u32 %v1913_v50, %v1912_v55  ;;  %v1923_v34 = vsel %vm1915_vm3, %v1902_v33, %v1905_v10  ;;  %v1924_v21 = vsel %vm1918_vm11, %v1911_v32, 920167782  ;;  %v1991_v3 = vshrl.u32 %v1990_v28, 23 }
 0x31b   : > { %v3991_v48 = vsub.s32 %v1839_v38, %v1842_v47  ;;  %v1899_v17 = vshrl.u32 %v4427_v62, %v1898_v61  ;;  %vm1917_vm7 = vcmp.lt.s32.totalorder %v1896_v36, 3  ;;  %v3996_v37 = vadd.f32 %v3663_v0, %v3925_v59 }
 0x31c   : > { %v1755_v12 = vand.u32 2147483647, %v1754_v24  ;;  %vm1916_vm9 = vcmp.lt.s32.totalorder %v1896_v36, 2  ;;  %v1920_v9 = vsel %vm1918_vm11, %v1908_v43, 2102212464  ;;  %v1925_v20 = vsel %vm1917_vm7, %v1908_v43, %v1924_v21 }
 0x31d   : > { %v1757_v58 = vcvt.s32.f32 %v1750_v46  ;;  %v1845_v30 = vsub.s32 0, %v3991_v48  ;;  %v1926_v28 = vsel %vm1916_vm9, %v1923_v34, %v1925_v20  ;;  %v1927_v38 = vsel %vm1915_vm3, %v1905_v10, %v1908_v43 }
 0x31e   : > { %v1919_v61 = vsel %vm1915_vm3, %v1899_v17, %v1902_v33  ;;  %v1928_v13 = vsel %vm1918_vm11, %v1914_v22, 1326507024  ;;  %v4006_v0 = vmul.u32.u64.low %v3978_v26, %v1926_v28  ;;  %v4007_v59 = vmul.u32.u64.high %v3978_v26, %v1926_v28, %v4006_v0 }
 0x31f   : > { %vm1677_vm13 = vcmp.lt.s32.totalorder %v3656_v51, 0  ;;  %v2400_v49 = vmin.u32 %v1845_v30, %v3991_v48  ;;  %v1921_v29 = vsel %vm1917_vm7, %v1905_v10, %v1920_v9  ;;  %v1929_v50 = vsel %vm1917_vm7, %v1911_v32, %v1928_v13 }
 0x320   : > { %v2407_v53 = vadd.s32 4294967169, %v1991_v3  ;;  %v1656_v24 = vsel %vm1573_vm14, %v1655_v54, %v1654_v39  ;;  %v1758_v33 = vmul.f32 %v1757_v58, %v1755_v12  ;;  %v1930_v43 = vsel %vm1916_vm9, %v1927_v38, %v1929_v50 }
 0x321   : > { %v2094_v55 = vand.u32 2139095040, %v3996_v37  ;;  %v1847_v46 = vclz %v2400_v49  ;;  %v4019_v47 = vmul.u32.u64.low %v3978_v26, %v1930_v43  ;;  %v4020_v22 = vmul.u32.u64.high %v3978_v26, %v1930_v43, %v4019_v47 }
 0x322   : > { %v1997_v34 = vadd.s32 1, %v2407_v53  ;;  %2576 = vsinq.f32 %v3885_v23  ;;  %v1657_v10 = vsub.s32 4, %v3825_v25  ;;  %v1922_v32 = vsel %vm1916_vm9, %v1919_v61, %v1921_v29 }
 0x323   : > { %v1941_v21 = vadd.s32 1, %v4007_v59  ;;  %2578 = vcosq.f32 %v3954_v31  ;;  %v4030_v39 = vsel %vm3985_vm5, %v3645_v63, %v1656_v24  ;;  %vm4034_vm2 = vcmp.le.f32.partialorder %v1675_v57, 0.7853982 }
 0x324   : > { %v1994_v23 = vand.u32 8388607, %v4411_v1  ;;  %vm1998_vm15 = vcmp.gt.s32.totalorder %v1997_v34, 0  ;;  %v1759_v36 = vxor.u32 2147483648, %v1758_v33  ;;  %v2401_v3 = vadd.s32 4294967294, %v1847_v46 }
 0x325   : > { %v1999_v17 = vsel %vm1998_vm15, %v1997_v34, 0  ;;  %v2095_v12 = vshrl.u32 %v2094_v55, 23  ;;  %2580 = vsinq.f32 %v3954_v31  ;;  %v1938_v20 = vmul.u32 %v3978_v26, %v1922_v32 }
 0x326   : > { %vm1940_vm1 = vc.u32 %v4020_v22, %v4006_v0  ;;  %v4050_v57 = vsel %vm1573_vm14, %v1657_v10, %v3825_v25  ;;  %2582 = vcosq.f32 %v4030_v39  ;;  %v2001_v30 = vand.u32 31, %v1999_v17 }
 0x327   : > { %v1942_v58 = vsel %vm1940_vm1, %v1941_v21, %v4007_v59  ;;  %v4056_v28 = vadd.s32 %v3921_v15, %v3937_v16  ;;  %v1995_v38 = vor.u32 8388608, %v1994_v23  ;;  %v1553_v26 = vsub.s32 4, %v3768_v52 }
 0x328   : > { %v1943_v31 = vadd.s32 %v1942_v58, %v1938_v20  ;;  %v1760_v61 = vsel %vm1677_vm13, %v1759_v36, %v1758_v33  ;;  %vm2402_vm0 = vcmp.lt.s32.totalorder %v2401_v3, 0  ;;  %v2002_v13 = vsub.s32 32, %v2001_v30 }
 0x329   : > { %v2411_v25 = vadd.s32 4294967169, %v2095_v12  ;;  %v2000_v29 = vshrl.u32 %v1999_v17, 5  ;;  %v2004_v50 = vshll.u32 %v4427_v62, %v2001_v30  ;;  %v2007_v59 = vshll.u32 %v4434_v56, %v2001_v30 }
 0x32a   : > { %v1944_v49 = vadd.s32 536870912, %v1943_v31  ;;  %v2005_v53 = vshrl.u32 %v4434_v56, %v2002_v13  ;;  %v2008_v15 = vshrl.u32 %v4435_v35, %v2002_v13  ;;  %v2010_v16 = vshll.u32 %v4435_v35, %v2001_v30 }
 0x32b   : > { %v2011_v24 = vshrl.u32 %v4430_v60, %v2002_v13  ;;  %v4067_v43 = vsel %vm2402_vm0, 0, %v2401_v3  ;;  %v2013_v55 = vshll.u32 %v4430_v60, %v2001_v30  ;;  %v2014_v46 = vshrl.u32 %v4477_v8, %v2002_v13 }
 0x32c   : > { %v4069_v33 = vshrl.u32 %v1944_v49, 30  ;;  %v4073_v47 = vpop.eup %2576  ;;  %v1763_v34 = vsel %vm4034_vm2, %v3656_v51, %v1760_v61  ;;  %v2006_v10 = vor.u32 %v2005_v53, %v2004_v50  ;;  %v2009_v32 = vor.u32 %v2008_v15, %v2007_v59 }
 0x32d   : > { %v2012_v21 = vor.u32 %v2011_v24, %v2010_v16  ;;  %v4078_v23 = vpop.eup %2578  ;;  %v2015_v3 = vor.u32 %v2014_v46, %v2013_v55  ;;  %v2035_v17 = vshll.u32 %v1995_v38, 8  ;;  %v1851_v20 = vsub.s32 32, %v4067_v43 }
 0x32e   : > { %v1946_v36 = vshll.u32 %v4069_v33, 30  ;;  %v2016_v58 = vshll.u32 %v4477_v8, %v2001_v30  ;;  %v2017_v49 = vshrl.u32 %v4478_v14, %v2002_v13  ;;  %v2101_v1 = vadd.s32 1, %v2411_v25 }
 0x32f   : > { %v4085_v27 = vpop.eup %2580  ;;  %vm2019_vm12 = vcmp.lt.s32.totalorder %v2000_v29, 1  ;;  %vm2021_vm14 = vcmp.lt.s32.totalorder %v2000_v29, 3  ;;  %vm2022_vm3 = vcmp.lt.s32.totalorder %v2000_v29, 4  ;;  %v2003_v30 = vshrl.u32 %v4427_v62, %v2002_v13 }
 0x330   : > { %v4087_v61 = vsub.s32 %v1943_v31, %v1946_v36  ;;  %v4089_v50 = vpop.eup %2582  ;;  %v2018_v59 = vor.u32 %v2017_v49, %v2016_v58  ;;  %v2024_v38 = vsel %vm2022_vm3, %v2012_v21, 2102212464  ;;  %v2027_v53 = vsel %vm2019_vm12, %v2006_v10, %v2009_v32 }
 0x331   : > { %v2028_v15 = vsel %vm2022_vm3, %v2015_v3, 920167782  ;;  %vm2020_vm11 = vcmp.lt.s32.totalorder %v2000_v29, 2  ;;  %v1855_v31 = vsub.s32 4294967266, %v4067_v43  ;;  %v2031_v55 = vsel %vm2019_vm12, %v2009_v32, %v2012_v21 }
 0x332   : > { %v1949_v16 = vsub.s32 0, %v4087_v61  ;;  %v2029_v25 = vsel %vm2021_vm14, %v2012_v21, %v2028_v15  ;;  %v2032_v46 = vsel %vm2022_vm3, %v2018_v59, 1326507024  ;;  %v2023_v58 = vsel %vm2019_vm12, %v2003_v30, %v2006_v10 }
 0x333   : > { %v2030_v24 = vsel %vm2020_vm11, %v2027_v53, %v2029_v25  ;;  %v2025_v49 = vsel %vm2021_vm14, %v2009_v32, %v2024_v38  ;;  %v2033_v40 = vsel %vm2021_vm14, %v2015_v3, %v2032_v46  ;;  %vm2102_vm7 = vcmp.gt.s32.totalorder %v2101_v1, 0 }
 0x334   : > { %v2404_v36 = vmin.u32 %v1949_v16, %v4087_v61  ;;  %v2034_v13 = vsel %vm2020_vm11, %v2031_v55, %v2033_v40  ;;  %v4103_v9 = vmul.u32.u64.low %v2035_v17, %v2030_v24  ;;  %v4104_v12 = vmul.u32.u64.high %v2035_v17, %v2030_v24, %v4103_v9 }
 0x335   : > { %v4107_v53 = vmul.u32.u64.low %v2035_v17, %v2034_v13  ;;  %v4108_v25 = vmul.u32.u64.high %v2035_v17, %v2034_v13, %v4107_v53  ;;  %v1554_v21 = vsel %vm1469_vm8, %v1553_v26, %v3768_v52  ;;  %v1660_v10 = vsel %vm3985_vm5, 0, %v4050_v57 }
 0x336   : > { %v1951_v15 = vclz %v2404_v36  ;;  %2584 = vsinq.f32 %v4030_v39  ;;  %v2026_v40 = vsel %vm2020_vm11, %v2023_v58, %v2025_v49  ;;  %v2103_v32 = vsel %vm2102_vm7, %v2101_v1, 0 }
 0x337   : > { %v1853_v3 = vshrl.u32 %v4056_v28, %v1851_v20  ;;  %v1856_v59 = vadd.s32 127, %v1855_v31  ;;  %v4487_v38 = vand.u32 2147483647, %v3996_v37  ;;  %v2105_v30 = vand.u32 31, %v2103_v32 }
 0x338   : > { %2586 = vcosq.f32 %v1763_v34  ;;  %v2405_v24 = vadd.s32 4294967294, %v1951_v15  ;;  %v2045_v52 = vadd.s32 1, %v4104_v12  ;;  %v1556_v4 = vsel %vm3914_vm4, 0, %v1554_v21 }
 0x339   : > { %v2098_v16 = vand.u32 8388607, %v4487_v38  ;;  %v1852_v39 = vshll.u32 %v3991_v48, %v4067_v43  ;;  %v2042_v57 = vmul.u32 %v2035_v17, %v2026_v40  ;;  %vm2044_vm8 = vc.u32 %v4108_v25, %v4103_v9 }
 0x33a   : > { %v2106_v1 = vsub.s32 32, %v2105_v30  ;;  %v4488_v28 = vsel %vm3875_vm10, 0, %v3948_v42  ;;  %v4134_v29 = vadd.s32 3, %v1660_v10  ;;  %2588 = vsinq.f32 %v1763_v34 }
 0x33b   : > { %v4132_v26 = vadd.s32 3, %v4488_v28  ;;  %v2046_v2 = vsel %vm2044_vm8, %v2045_v52, %v4104_v12  ;;  %v4137_v20 = vor.u32 %v1853_v3, %v1852_v39  ;;  %v1857_v31 = vshll.u32 %v1856_v59, 23 }
 0x33c   : > { %v2047_v48 = vadd.s32 %v2046_v2, %v2042_v57  ;;  %v2099_v43 = vor.u32 8388608, %v2098_v16  ;;  %vm2406_vm4 = vcmp.lt.s32.totalorder %v2405_v24, 0  ;;  %v2109_v17 = vshrl.u32 %v4434_v56, %v2106_v1 }
 0x33d   : > { %v2112_v55 = vshrl.u32 %v4435_v35, %v2106_v1  ;;  %v1560_v44 = vadd.s32 3, %v1556_v4  ;;  %v2108_v42 = vshll.u32 %v4427_v62, %v2105_v30  ;;  %v2111_v36 = vshll.u32 %v4434_v56, %v2105_v30 }
 0x33e   : > { %v2048_v46 = vadd.s32 536870912, %v2047_v48  ;;  %v2115_v34 = vshrl.u32 %v4430_v60, %v2106_v1  ;;  %v2104_v58 = vshrl.u32 %v2103_v32, 5  ;;  %v2114_v12 = vshll.u32 %v4435_v35, %v2105_v30 }
 0x33f   : > { %v2117_v49 = vshll.u32 %v4430_v60, %v2105_v30  ;;  %v2118_v13 = vshrl.u32 %v4477_v8, %v2106_v1  ;;  %v4147_v15 = vsel %vm2406_vm4, 0, %v2405_v24  ;;  %v2110_v21 = vor.u32 %v2109_v17, %v2108_v42 }
 0x340   : > { %v4149_v53 = vshrl.u32 %v2048_v46, 30  ;;  %v2113_v10 = vor.u32 %v2112_v55, %v2111_v36  ;;  %v4151_v40 = vpop.eup %2584  ;;  %v2116_v3 = vor.u32 %v2115_v34, %v2114_v12  ;;  %v2120_v56 = vshll.u32 %v4477_v8, %v2105_v30 }
 0x341   : > { %v2119_v59 = vor.u32 %v2118_v13, %v2117_v49  ;;  %v2121_v32 = vshrl.u32 %v4478_v14, %v2106_v1  ;;  %v4155_v38 = vor.u32 4788187, %v1857_v31  ;;  %v1861_v60 = vcvt.s32.f32 %v4137_v20 }
 0x342   : > { %v1939_v35 = vadd.s32 %v4006_v0, %v4020_v22  ;;  %v2050_v16 = vshll.u32 %v4149_v53, 30  ;;  %v4161_v24 = vpop.eup %2586  ;;  %v1959_v52 = vsub.s32 4294967266, %v4147_v15  ;;  %v2139_v39 = vshll.u32 %v2099_v43, 8 }
 0x343   : > { %v2122_v4 = vor.u32 %v2121_v32, %v2120_v56  ;;  %v1561_v57 = vand.u32 3, %v1560_v44  ;;  %v2107_v8 = vshrl.u32 %v4427_v62, %v2106_v1  ;;  %vm2123_vm10 = vcmp.lt.s32.totalorder %v2104_v58, 1 }
 0x344   : > { %v4164_v28 = vsub.s32 %v2047_v48, %v2050_v16  ;;  %vm2126_vm5 = vcmp.lt.s32.totalorder %v2104_v58, 4  ;;  %v4167_v14 = vpop.eup %2588  ;;  %vm2125_vm9 = vcmp.lt.s32.totalorder %v2104_v58, 3  ;;  %v2131_v0 = vsel %vm2123_vm10, %v2110_v21, %v2113_v10 }
 0x345   : > { %v2128_v30 = vsel %vm2126_vm5, %v2116_v3, 2102212464  ;;  %v2132_v22 = vsel %vm2126_vm5, %v2119_v59, 920167782  ;;  %v1955_v2 = vsub.s32 32, %v4147_v15  ;;  %v2127_v31 = vsel %vm2123_vm10, %v2107_v8, %v2110_v21 }
 0x346   : > { %v2053_v20 = vsub.s32 0, %v4164_v28  ;;  %v2129_v17 = vsel %vm2125_vm9, %v2113_v10, %v2128_v30  ;;  %vm2124_vm15 = vcmp.lt.s32.totalorder %v2104_v58, 2  ;;  %v2133_v43 = vsel %vm2125_vm9, %v2116_v3, %v2132_v22 }
 0x347   : > { %v2135_v48 = vsel %vm2123_vm10, %v2113_v10, %v2116_v3  ;;  %v2136_v55 = vsel %vm2126_vm5, %v2122_v4, 1326507024  ;;  %v1960_v44 = vadd.s32 127, %v1959_v52  ;;  %v2134_v1 = vsel %vm2124_vm15, %v2131_v0, %v2133_v43 }
 0x348   : > { %v2408_v62 = vmin.u32 %v2053_v20, %v4164_v28  ;;  %v2137_v46 = vsel %vm2125_vm9, %v2119_v59, %v2136_v55  ;;  %v2130_v42 = vsel %vm2124_vm15, %v2127_v31, %v2129_v17  ;;  %v1564_v58 = vxor.u32 2147483648, %v4085_v27 }
 0x349   : > { %v2138_v36 = vsel %vm2124_vm15, %v2135_v48, %v2137_v46  ;;  %v4172_v34 = vmul.u32.u64.low %v2139_v39, %v2134_v1  ;;  %v4173_v12 = vmul.u32.u64.high %v2139_v39, %v2134_v1, %v4172_v34  ;;  %v1859_v21 = vand.u32 2147483647, %v4155_v38 }
 0x34a   : > { %v2055_v49 = vclz %v2408_v62  ;;  %v4176_v13 = vmul.u32.u64.low %v2139_v39, %v2138_v36  ;;  %v4177_v56 = vmul.u32.u64.high %v2139_v39, %v2138_v36, %v4176_v13  ;;  %v1956_v10 = vshll.u32 %v4087_v61, %v4147_v15 }
 0x34b   : > { %v1957_v3 = vshrl.u32 %v1939_v35, %v1955_v2  ;;  %v2043_v59 = vadd.s32 %v4103_v9, %v4108_v25  ;;  %v1961_v32 = vshll.u32 %v1960_v44, 23  ;;  %v2146_v52 = vmul.u32 %v2139_v39, %v2130_v42 }
 0x34c   : > { %v2409_v16 = vadd.s32 4294967294, %v2055_v49  ;;  %vm1559_vm1 = vweird.f32 %v3641_v18  ;;  %v1567_v4 = vxor.u32 2147483648, %v4078_v23  ;;  %v2149_v8 = vadd.s32 1, %v4173_v12 }
 0x34d   : > { %vm1563_vm0 = vcmp.eq.s32.totalorder %v1561_v57, 0  ;;  %vm1566_vm12 = vcmp.eq.s32.totalorder %v1561_v57, 2  ;;  %v1761_v38 = vsub.s32 4, %v3879_v19  ;;  %vm2148_vm3 = vc.u32 %v4177_v56, %v4172_v34 }
 0x34e   : > { %vm2410_vm14 = vcmp.lt.s32.totalorder %v2409_v16, 0  ;;  %v1565_v61 = vsel %vm1563_vm0, %v4078_v23, %v1564_v58  ;;  %v1568_v9 = vsel %vm1566_vm12, %v1567_v4, %v4085_v27  ;;  %v1958_v25 = vor.u32 %v1957_v3, %v1956_v10 }
 0x34f   : > { %v2058_v15 = vsel %vm2410_vm14, 0, %v2409_v16  ;;  %v2150_v35 = vsel %vm2148_vm3, %v2149_v8, %v4173_v12  ;;  %v1762_v39 = vsel %vm1677_vm13, %v1761_v38, %v3879_v19  ;;  %vm1562_vm11 = vcmp.lt.s32.totalorder %v1561_v57, 2 }
 0x350   : > { %v2059_v30 = vsub.s32 32, %v2058_v15  ;;  %v2063_v0 = vsub.s32 4294967266, %v2058_v15  ;;  %v2151_v22 = vadd.s32 %v2150_v35, %v2146_v52  ;;  %v4197_v2 = vmul.f32 %v1861_v60, %v1859_v21 }
 0x351   : > { %v1962_v20 = vor.u32 4788187, %v1961_v32  ;;  %v1569_v31 = vsel %vm1562_vm11, %v1565_v61, %v1568_v9  ;;  %v1764_v23 = vsel %vm4034_vm2, 0, %v1762_v39  ;;  %v1965_v55 = vcvt.s32.f32 %v1958_v25 }
 0x352   : > { %v2061_v27 = vshrl.u32 %v2043_v59, %v2059_v30  ;;  %v2064_v17 = vadd.s32 127, %v2063_v0  ;;  %v2152_v43 = vadd.s32 536870912, %v2151_v22  ;;  %v1768_v48 = vadd.s32 3, %v1764_v23 }
 0x353   : > { %v2060_v44 = vshll.u32 %v4164_v28, %v2058_v15  ;;  %v1772_v19 = vxor.u32 2147483648, %v4167_v14  ;;  %v1457_v62 = vand.u32 3, %v4132_v26  ;;  %v1775_v46 = vxor.u32 2147483648, %v4161_v24 }
 0x354   : > { %v2065_v1 = vshll.u32 %v2064_v17, 23  ;;  %v4204_v57 = vshrl.u32 %v2152_v43, 30  ;;  %v1769_v60 = vand.u32 3, %v1768_v48  ;;  %v1963_v42 = vand.u32 2147483647, %v1962_v20 }
 0x355   : > { %v1570_v54 = vsel %vm1559_vm1, nan, %v1569_v31  ;;  %vm1767_vm13 = vweird.f32 %v3656_v51  ;;  %v1460_v36 = vxor.u32 2147483648, %v4073_v47  ;;  %v2062_v12 = vor.u32 %v2061_v27, %v2060_v44 }
 0x356   : > { %v2066_v28 = vor.u32 4788187, %v2065_v1  ;;  %v2154_v49 = vshll.u32 %v4204_v57, 30  ;;  %v1463_v26 = vxor.u32 2147483648, %v3980_v6  ;;  %vm1771_vm2 = vcmp.eq.s32.totalorder %v1769_v60, 0 }
 0x357   : > { %vm1774_vm7 = vcmp.eq.s32.totalorder %v1769_v60, 2  ;;  %vm1459_vm8 = vcmp.eq.s32.totalorder %v1457_v62, 0  ;;  %vm1462_vm4 = vcmp.eq.s32.totalorder %v1457_v62, 2  ;;  %vm1770_vm10 = vcmp.lt.s32.totalorder %v1769_v60, 2 }
 0x358   : > { %v2155_v13 = vsub.s32 %v2151_v22, %v2154_v49  ;;  %v1773_v58 = vsel %vm1771_vm2, %v4161_v24, %v1772_v19  ;;  %v1776_v18 = vsel %vm1774_vm7, %v1775_v46, %v4167_v14  ;;  %v2067_v21 = vand.u32 2147483647, %v2066_v28 }
 0x359   : > { %v1777_v10 = vsel %vm1770_vm10, %v1773_v58, %v1776_v18  ;;  %v1665_v3 = vand.u32 3, %v4134_v29  ;;  %v1668_v59 = vxor.u32 2147483648, %v4151_v40  ;;  %v1461_v52 = vsel %vm1459_vm8, %v3980_v6, %v1460_v36 }
 0x35a   : > { %v2157_v32 = vsub.s32 0, %v2155_v13  ;;  %v1778_v16 = vsel %vm1767_vm13, nan, %v1777_v10  ;;  %v1464_v4 = vsel %vm1462_vm4, %v1463_v26, %v4073_v47  ;;  %v1966_v8 = vmul.f32 %v1965_v55, %v1963_v42 }
 0x35b   : > { %v2069_v38 = vcvt.s32.f32 %v2062_v12  ;;  %v2196_v61 = vpack.c.bf16 %v1778_v16, %v1570_v54  ;;  %vm1667_vm5 = vcmp.eq.s32.totalorder %v1665_v3, 0  ;;  %vm1458_vm9 = vcmp.lt.s32.totalorder %v1457_v62, 2 }
 0x35c   : > { %v2412_v24 = vmin.u32 %v2157_v32, %v2155_v13  ;;  %v1669_v14 = vsel %vm1667_vm5, %v4089_v50, %v1668_v59  ;;  %v1671_v29 = vxor.u32 2147483648, %v4089_v50  ;;  %v1465_v25 = vsel %vm1458_vm9, %v1461_v52, %v1464_v4 }
 0x35d   : > { %v2070_v9 = vmul.f32 %v2069_v38, %v2067_v21  ;;  %2209 = vmatprep.subr.bf16.mxu0 %v2196_v61  ;;  %vm1670_vm15 = vcmp.eq.s32.totalorder %v1665_v3, 2  ;;  %vm1666_vm1 = vcmp.lt.s32.totalorder %v1665_v3, 2  ;;  %v1863_v47 = vxor.u32 2147483648, %v4197_v2 }
 0x35e   : > { %v2159_v51 = vclz %v2412_v24  ;;  %v1672_v6 = vsel %vm1670_vm15, %v1671_v29, %v4151_v40  ;;  %vm1455_vm0 = vweird.f32 %v3639_v11  ;;  %vm1663_vm12 = vweird.f32 %v3645_v63 }
 0x35f   : > { %v1673_v15 = vsel %vm1666_vm1, %v1669_v14, %v1672_v6  ;;  %v1967_v35 = vxor.u32 2147483648, %v1966_v8  ;;  %v1466_v30 = vsel %vm1455_vm0, nan, %v1465_v25  ;;  %v2071_v50 = vxor.u32 2147483648, %v2070_v9 }
 0x360   : > { %v2413_v39 = vadd.s32 4294967294, %v2159_v51  ;;  %v1674_v0 = vsel %vm1663_vm12, nan, %v1673_v15  ;;  %vm1781_vm14 = vcmp.lt.s32.totalorder %v3809_v45, 0  ;;  %vm1885_vm11 = vcmp.lt.s32.totalorder %v3860_v5, 0 }
 0x361   : > { %v2195_v22 = vpack.c.bf16 %v1674_v0, %v1466_v30  ;;  %v1864_v40 = vsel %vm1781_vm14, %v1863_v47, %v4197_v2  ;;  %vm1989_vm13 = vcmp.lt.s32.totalorder %v3933_v7, 0  ;;  %v1968_v63 = vsel %vm1885_vm11, %v1967_v35, %v1966_v8 }
 0x362   : > { %vm2414_vm3 = vcmp.lt.s32.totalorder %v2413_v39, 0  ;;  %v2147_v20 = vadd.s32 %v4172_v34, %v4177_v56  ;;  %v4489_v27 = vand.u32 2147483647, %v3809_v45  ;;  %v4492_v2 = vand.u32 2147483647, %v3860_v5 }
 0x363   : > { %v2162_v11 = vsel %vm2414_vm3, 0, %v2413_v39  ;;  %2210 = vmatpush1.bf16.msra.mxu0 %v2195_v22  ;;  %v2072_v48 = vsel %vm1989_vm13, %v2071_v50, %v2070_v9  ;;  %v4495_v62 = vand.u32 2147483647, %v3933_v7  ;;  %v2073_v54 = vsub.s32 4, %v4149_v53 }
 0x364   : > { %v2163_v31 = vsub.s32 32, %v2162_v11  ;;  %v2167_v23 = vsub.s32 4294967266, %v2162_v11  ;;  %vm4239_vm2 = vcmp.le.f32.partialorder %v4489_v27, 0.7853982  ;;  %vm4245_vm7 = vcmp.le.f32.partialorder %v4492_v2, 0.7853982 }
 0x365   : > { %v1867_v34 = vsel %vm4239_vm2, %v3809_v45, %v1864_v40  ;;  %v2164_v56 = vshll.u32 %v2155_v13, %v2162_v11  ;;  %v1971_v19 = vsel %vm4245_vm7, %v3860_v5, %v1968_v63  ;;  %vm4259_vm8 = vcmp.le.f32.partialorder %v4495_v62, 0.7853982 }
 0x366   : > { %v2165_v55 = vshrl.u32 %v2147_v20, %v2163_v31  ;;  %v2168_v44 = vadd.s32 127, %v2167_v23  ;;  %v2075_v60 = vsel %vm4259_vm8, %v3933_v7, %v2072_v48  ;;  %2590 = vcosq.f32 %v1867_v34 }
 0x367   : > { %2592 = vcosq.f32 %v1971_v19  ;;  %v1969_v12 = vsub.s32 4, %v4069_v33  ;;  %v1865_v28 = vsub.s32 4, %v3975_v41  ;;  %v2074_v13 = vsel %vm1989_vm13, %v2073_v54, %v4149_v53 }
 0x368   : > { %v2166_v46 = vor.u32 %v2165_v55, %v2164_v56  ;;  %v2169_v42 = vshll.u32 %v2168_v44, 23  ;;  %2594 = vcosq.f32 %v2075_v60  ;;  %v2177_v18 = vsub.s32 4, %v4204_v57 }
 0x369   : > { %2596 = vsinq.f32 %v2075_v60  ;;  %v1970_v21 = vsel %vm1885_vm11, %v1969_v12, %v4069_v33  ;;  %v1866_v10 = vsel %vm1781_vm14, %v1865_v28, %v3975_v41  ;;  %v2076_v59 = vsel %vm4259_vm8, 0, %v2074_v13 }
 0x36a   : > { %v2170_v36 = vor.u32 4788187, %v2169_v42  ;;  %v2173_v26 = vcvt.s32.f32 %v2166_v46  ;;  %2598 = vsinq.f32 %v1971_v19  ;;  %vm2093_vm4 = vcmp.lt.s32.totalorder %v3996_v37, 0 }
 0x36b   : > { %2600 = vsinq.f32 %v1867_v34  ;;  %v4498_v32 = vand.u32 2147483647, %v3996_v37  ;;  %v1972_v33 = vsel %vm4245_vm7, 0, %v1970_v21  ;;  %v2178_v52 = vsel %vm2093_vm4, %v2177_v18, %v4204_v57 }
 0x36c   : > { %v2171_v49 = vand.u32 2147483647, %v2170_v36  ;;  %v1868_v41 = vsel %vm4239_vm2, 0, %v1866_v10  ;;  %v2080_v61 = vadd.s32 3, %v2076_v59  ;;  %v1976_v14 = vadd.s32 3, %v1972_v33 }
 0x36d   : > { %vm4284_vm10 = vcmp.le.f32.partialorder %v4498_v32, 0.7853982  ;;  %v1872_v25 = vadd.s32 3, %v1868_v41  ;;  %vm2079_vm8 = vweird.f32 %v3933_v7  ;;  %v2199_v7 = vld [vmem:[%s4361_s5] sm:$0xf] }
 0x36e   : > { %v2174_v58 = vmul.f32 %v2173_v26, %v2171_v49  ;;  %v2180_v29 = vsel %vm4284_vm10, 0, %v2178_v52  ;;  %v2081_v47 = vand.u32 3, %v2080_v61  ;;  %v1977_v15 = vand.u32 3, %v1976_v14 }
 0x36f   : > { %v2184_v6 = vadd.s32 3, %v2180_v29  ;;  %v1873_v50 = vand.u32 3, %v1872_v25 }
 0x370   : > { %v2175_v3 = vxor.u32 2147483648, %v2174_v58  ;;  %v2591_v4 = vpop.eup %2590  ;;  %vm2083_vm5 = vcmp.eq.s32.totalorder %v2081_v47, 0  ;;  %vm2086_vm9 = vcmp.eq.s32.totalorder %v2081_v47, 2  ;;  %vm1979_vm15 = vcmp.eq.s32.totalorder %v1977_v15, 0 }
 0x371   : > { %v2593_v38 = vpop.eup %2592  ;;  %v1879_v40 = vxor.u32 2147483648, %v2591_v4  ;;  %v2185_v11 = vand.u32 3, %v2184_v6  ;;  %vm1982_vm1 = vcmp.eq.s32.totalorder %v1977_v15, 2  ;;  %vm1875_vm0 = vcmp.eq.s32.totalorder %v1873_v50, 0 }
 0x372   : > { %v2176_v16 = vsel %vm2093_vm4, %v2175_v3, %v2174_v58  ;;  %v2595_v24 = vpop.eup %2594  ;;  %v1983_v0 = vxor.u32 2147483648, %v2593_v38  ;;  %vm1878_vm12 = vcmp.eq.s32.totalorder %v1873_v50, 2  ;;  %vm2082_vm14 = vcmp.lt.s32.totalorder %v2081_v47, 2 }
 0x373   : > { %v2179_v8 = vsel %vm4284_vm10, %v3996_v37, %v2176_v16  ;;  %v2597_v9 = vpop.eup %2596  ;;  %v2087_v39 = vxor.u32 2147483648, %v2595_v24  ;;  %vm1978_vm3 = vcmp.lt.s32.totalorder %v1977_v15, 2  ;;  %vm2190_vm11 = vcmp.eq.s32.totalorder %v2185_v11, 2 }
 0x374   : > { %2602 = vcosq.f32 %v2179_v8  ;;  %v2599_v57 = vpop.eup %2598  ;;  %v2084_v35 = vxor.u32 2147483648, %v2597_v9  ;;  %vm2187_vm13 = vcmp.eq.s32.totalorder %v2185_v11, 0  ;;  %vm1874_vm2 = vcmp.lt.s32.totalorder %v1873_v50, 2 }
 0x375   : > { %2604 = vsinq.f32 %v2179_v8  ;;  %v2601_v51 = vpop.eup %2600  ;;  %v1980_v30 = vxor.u32 2147483648, %v2599_v57  ;;  %v2088_v20 = vsel %vm2086_vm9, %v2087_v39, %v2597_v9  ;;  %v1984_v27 = vsel %vm1982_vm1, %v1983_v0, %v2599_v57 }
 0x376   : > { %v1876_v22 = vxor.u32 2147483648, %v2601_v51  ;;  %v2085_v63 = vsel %vm2083_vm5, %v2595_v24, %v2084_v35  ;;  %v1880_v48 = vsel %vm1878_vm12, %v1879_v40, %v2601_v51  ;;  %vm2186_vm7 = vcmp.lt.s32.totalorder %v2185_v11, 2 }
 0x377   : > { %v1981_v23 = vsel %vm1979_vm15, %v2593_v38, %v1980_v30  ;;  %v2089_v56 = vsel %vm2082_vm14, %v2085_v63, %v2088_v20  ;;  %vm1975_vm4 = vweird.f32 %v3860_v5  ;;  %vm2183_vm10 = vweird.f32 %v3996_v37  ;;  %v2204_v5 = vpop.permute.xlu0 %2203 }
 0x378   : > { %v1877_v43 = vsel %vm1875_vm0, %v2591_v4, %v1876_v22  ;;  %v1985_v55 = vsel %vm1978_vm3, %v1981_v23, %v1984_v27  ;;  %v2090_v60 = vsel %vm2079_vm8, nan, %v2089_v56  ;;  %vm1871_vm5 = vweird.f32 %v3809_v45 }
 0x379   : > { %v1881_v62 = vsel %vm1874_vm2, %v1877_v43, %v1880_v48  ;;  %v1986_v46 = vsel %vm1975_vm4, nan, %v1985_v55 }
 0x37a   : > { %v1882_v36 = vsel %vm1871_vm5, nan, %v1881_v62 }
 0x37b   : > { %v2197_v12 = vpack.c.bf16 %v2090_v60, %v1882_v36 }
 0x37e   : > { %v2603_v31 = vpop.eup %2602 }
 0x37f   : > { %v2605_v17 = vpop.eup %2604  ;;  %v2191_v2 = vxor.u32 2147483648, %v2603_v31 }
 0x380   : > { %v2188_v34 = vxor.u32 2147483648, %v2605_v17 }
 0x381   : > { %v2192_v44 = vsel %vm2190_vm11, %v2191_v2, %v2605_v17 }
 0x382   : > { %v2189_v19 = vsel %vm2187_vm13, %v2603_v31, %v2188_v34 }
 0x383   : > { %v2193_v1 = vsel %vm2186_vm7, %v2189_v19, %v2192_v44 }
 0x384   : > { %v2194_v42 = vsel %vm2183_vm10, nan, %v2193_v1 }
 0x385   : > { %v2198_v54 = vpack.c.bf16 %v2194_v42, %v1986_v46 }
 0x387   : > { %2211 = vmatprep.subr.bf16.mxu0 %v2198_v54 }
 0x388   : > { %2212 = vmatpush1.bf16.msra.mxu0 %v2197_v12 }
 0x38b   : > { %2415 = vmatmul.mubr.msk.bf16.vlgmr.msra.gmra.mrb[8].mxu0 %vm1303_vm6, %v2199_v7 }
 0x45e   : > { %v2243_v37 = vpop.f32.mrb[8].mxu0 }
 0x45f   : > { %v2244_v45 = vadd.f32 %v2243_v37, %v2204_v5  ;;  %v2245_v28 = vpop.f32.mrb[9].mxu0 }
 0x460   : > { %v2246_v49 = vadd.f32 %v2245_v28, %v2204_v5  ;;  %v2247_v26 = vpop.f32.mrb[10].mxu0 }
 0x461   : > { %2250 = vst [vmem:[%s315_s14] sm:$0xff] %v2244_v45  ;;  %v2248_v13 = vpop.f32.mrb[11].mxu0 }
 0x462   : > { %2251 = vst [vmem:[%s315_s14 + $0x8] sm:$0xff] %v2246_v49 }
 0x463   : > { %2619 = shalt.err (!%p2616_p5)
}
 0x464   : > { %s2620_s20 = scalar_lea.hbm %s4312_s18, 256  ;;  %s2624_s9 = scalar_lea.hbm %s4363_s7, 1024 }
 0x465   : > { %p2621_p7 = scmp.ne.s32.totalorder %s4312_s18, %s2620_s20  ;;  %p2625_p11 = scmp.lt.u32.totalorder %s4312_s18, %s4363_s7 }
 0x466   : > { %p2626_p12 = scmp.lt.u32.totalorder %s2624_s9, %s2620_s20  ;;  %p2628_p0 = scmp.lt.u32.totalorder %s2620_s20, %s4312_s18 }
 0x467   : > { %p2622_p9 = pnand %p2621_p7, %p2756_p6 }
 0x468   : > { %p2627_p13 = por %p2626_p12, %p2625_p11 }
 0x469   : > { %p2623_p10 = pneg %p2622_p9 }
 0x46a   : > { %p2629_p1 = por %p2628_p0, %p2627_p13 }
 0x46c   : > { %p2630_p2 = pnand %p2629_p1, %p2623_p10 }
 0x46e   : > { %2633 = shalt.err (!%p2630_p2)
}
 0x46f   : > { %2487 = dma.vmem_to_hbm [thread:$0]  (%p2756_p6), %s4314_s15, 256, %s4312_s18, %s2253_s28  }
 0x470 PF: > { %p2493_p3 = scmp.ge.s32.totalorder %s2668_s27, 2  ;;  %s2279_s16 = sand.u32 1, %s2656_s24  }
 0x471   : > { %s2280_s17 = scalar_lea.sflag [#allocation4], %s2279_s16 }
 0x472   : > { %p2490_p4 = pnand %p2493_p3, %p2760_p8 }
 0x474   : > { %2651 = dma.done.wait (!%p2490_p4), %s2280_s17, 256  }
 0x475   : > { %2653 = vsyncadd (!%p2490_p4), %s2280_s17, 4294967040  ;;  %p17_p5 = scmp.ge.s32.totalorder %s2741_s30, 6   ;;  %s4501_s24 = smov %s2660_s25 }
 0x476   : > { %s4502_s25 = smov %s2664_s26  ;;  %s4503_s26 = smov %s2754_s10 }
 0x477   : > { %s4504_s27 = smov %s2741_s30  ;;  %19 = sbr.rel (!%p17_p5) target bundleno = 3 (0x3), region = 126 }
 0x47e   :  { %2285 = vsyncpa [#allocation4], 1 }
 0x47f   :  { %2287 = vsyncpa [#allocation4 + $0x1], 1 }

</bundles_post_ra>
